<compile_context>
chip_gen: v6e
topology: v6e:2x2x1
jax: 0.10.0
libtpu: 0.0.40
codegen_flags: <defaults>
</compile_context>

<pallas_src>
import functools

import jax
import jax.numpy as jnp
from jax import lax
from jax.experimental import pallas as pl
from jax.experimental.pallas import tpu as pltpu


def _bert_embeddings_kernel(
    # scalar-prefetch (SMEM), one entry per flattened token:
    wid_smem,        # (M,) int32  word ids
    tid_smem,        # (M,) int32  token-type ids
    pid_smem,        # (M,) int32  position ids
    # inputs:
    word_hbm,        # (V, H) embedding table, stays in HBM (pl.ANY)
    ttyp_hbm,        # (T, H) token-type table, HBM (pl.ANY)
    pos_hbm,         # (P, H) position table, HBM (pl.ANY)
    gamma_ref,       # (1, H) LayerNorm weight (VMEM)
    beta_ref,        # (1, H) LayerNorm bias   (VMEM)
    # output:
    o_ref,           # (tm, H)
    # scratch:
    wbuf,            # VMEM (tm, H) gathered word rows
    tbuf,            # VMEM (tm, H) gathered token-type rows
    pbuf,            # VMEM (tm, H) gathered position rows
    sems,            # DMA semaphores (3, tm)
    *, eps, tm):
    base = pl.program_id(0) * tm

    # 1) Issue all gather DMAs for this tile (3 rows per token), then wait.
    @pl.loop(0, tm)
    def _(t):
        w = wid_smem[base + t]
        tt = tid_smem[base + t]
        p = pid_smem[base + t]
        pltpu.make_async_copy(word_hbm.at[pl.ds(w, 1), :],
                              wbuf.at[pl.ds(t, 1), :], sems.at[0, t]).start()
        pltpu.make_async_copy(ttyp_hbm.at[pl.ds(tt, 1), :],
                              tbuf.at[pl.ds(t, 1), :], sems.at[1, t]).start()
        pltpu.make_async_copy(pos_hbm.at[pl.ds(p, 1), :],
                              pbuf.at[pl.ds(t, 1), :], sems.at[2, t]).start()

    @pl.loop(0, tm)
    def _(t):
        pltpu.make_async_copy(word_hbm.at[pl.ds(0, 1), :],
                              wbuf.at[pl.ds(t, 1), :], sems.at[0, t]).wait()
        pltpu.make_async_copy(ttyp_hbm.at[pl.ds(0, 1), :],
                              tbuf.at[pl.ds(t, 1), :], sems.at[1, t]).wait()
        pltpu.make_async_copy(pos_hbm.at[pl.ds(0, 1), :],
                              pbuf.at[pl.ds(t, 1), :], sems.at[2, t]).wait()

    # 2) Sum the three embeddings in f32 (LN statistics must stay f32).
    y = (wbuf[...].astype(jnp.float32)
         + tbuf[...].astype(jnp.float32)
         + pbuf[...].astype(jnp.float32))                      # (tm, H)

    # 3) Single-pass LayerNorm with folded gamma*rsqrt scale.
    h = y.shape[-1]
    inv_h = 1.0 / h
    s1 = jnp.sum(y, axis=-1, keepdims=True)
    s2 = jnp.sum(y * y, axis=-1, keepdims=True)
    mean = s1 * inv_h
    var = s2 * inv_h - mean * mean
    inv = lax.rsqrt(var + eps)                                  # EUP slot
    scale = inv * gamma_ref[...].astype(jnp.float32)            # (tm, H)
    shift = beta_ref[...].astype(jnp.float32) - mean * scale    # (tm, H)
    # dropout is identity in eval/inference mode -> nothing to do.
    o_ref[...] = (y * scale + shift).astype(o_ref.dtype)


def bert_embeddings(input_ids, word_table, pos_table, ttyp_table, gamma, beta,
                    *, token_type_ids=None, position_ids=None,
                    textual_kv_length=0, eps=1e-12, tm=256):
    """input_ids: [B, S] int -> embeddings [B, S, H] (BertEmbeddings forward, eval mode)."""
    B, S = input_ids.shape
    V, H = word_table.shape
    T = ttyp_table.shape[0]
    P = pos_table.shape[0]
    assert word_table.dtype == pos_table.dtype == ttyp_table.dtype
    M = B * S

    # Token tile: big to amortize per-grid-step overhead, but <= M and a
    # multiple of 8 sublanes.
    tm = max(8, min(tm, M))
    assert tm % 8 == 0 and M % tm == 0, "B*S must be a multiple of the 8-aligned token tile"

    if position_ids is None:
        position_ids = jnp.arange(textual_kv_length, textual_kv_length + S,
                                  dtype=jnp.int32)[None, :]
        position_ids = jnp.broadcast_to(position_ids, (B, S))
    if token_type_ids is None:
        token_type_ids = jnp.zeros((B, S), dtype=jnp.int32)

    wid = input_ids.reshape(M).astype(jnp.int32)
    tid = token_type_ids.reshape(M).astype(jnp.int32)
    pid = position_ids.reshape(M).astype(jnp.int32)
    g2 = gamma.reshape(1, H)
    b2 = beta.reshape(1, H)

    kernel = functools.partial(_bert_embeddings_kernel, eps=eps, tm=tm)

    out = pl.pallas_call(
        kernel,
        out_shape=jax.ShapeDtypeStruct((M, H), word_table.dtype),
        grid_spec=pltpu.PrefetchScalarGridSpec(
            num_scalar_prefetch=3,                         # wid, tid, pid -> SMEM
            grid=(M // tm,),
            in_specs=[
                pl.BlockSpec(memory_space=pl.ANY),         # word table (HBM)
                pl.BlockSpec(memory_space=pl.ANY),         # token-type table (HBM)
                pl.BlockSpec(memory_space=pl.ANY),         # position table (HBM)
                pl.BlockSpec((1, H), lambda i, wid, tid, pid: (0, 0)),   # gamma
                pl.BlockSpec((1, H), lambda i, wid, tid, pid: (0, 0)),   # beta
            ],
            out_specs=pl.BlockSpec((tm, H), lambda i, wid, tid, pid: (i, 0)),
            scratch_shapes=[
                pltpu.VMEM((tm, H), word_table.dtype),     # word rows
                pltpu.VMEM((tm, H), word_table.dtype),     # token-type rows
                pltpu.VMEM((tm, H), word_table.dtype),     # position rows
                pltpu.SemaphoreType.DMA((3, tm)),
            ]),
        compiler_params=pltpu.CompilerParams(
            dimension_semantics=("parallel",)),            # megacore split on v7x
    )(wid, tid, pid, word_table, ttyp_table, pos_table, g2, b2)

    return out.reshape(B, S, H)


def _reference(input_ids, word_table, pos_table, ttyp_table, gamma, beta,
               token_type_ids, position_ids, eps=1e-12):
    we = jnp.take(word_table, input_ids, axis=0)
    te = jnp.take(ttyp_table, token_type_ids, axis=0)
    pe = jnp.take(pos_table, position_ids, axis=0)
    y = we + te + pe
    mean = jnp.mean(y, axis=-1, keepdims=True)
    var = jnp.mean((y - mean) ** 2, axis=-1, keepdims=True)
    return (y - mean) * lax.rsqrt(var + eps) * gamma + beta


if __name__ == "__main__":
    # Small but lane-dense config: hidden_size=128 (multiple of 128 lanes),
    # seq=64, batch=2 -> M=128 tokens, tm=64 -> 2 parallel grid steps.
    B, S, H = 2, 64, 128
    V, P, T = 1000, 128, 2
    pad_token_id = 0

    key = jax.random.PRNGKey(0)
    k1, k2, k3, k4, k5, k6, k7 = jax.random.split(key, 7)

    input_ids = jax.random.randint(k1, (B, S), 0, V, dtype=jnp.int32)
    token_type_ids = jax.random.randint(k2, (B, S), 0, T, dtype=jnp.int32)

    word_table = 0.02 * jax.random.normal(k3, (V, H), dtype=jnp.float32)
    word_table = word_table.at[pad_token_id].set(0.0)   # nn.Embedding padding_idx row
    pos_table = 0.02 * jax.random.normal(k4, (P, H), dtype=jnp.float32)
    ttyp_table = 0.02 * jax.random.normal(k5, (T, H), dtype=jnp.float32)
    gamma = jnp.ones((H,), jnp.float32) + 0.01 * jax.random.normal(k6, (H,), dtype=jnp.float32)
    beta = 0.01 * jax.random.normal(k7, (H,), dtype=jnp.float32)

    out = bert_embeddings(input_ids, word_table, pos_table, ttyp_table, gamma, beta,
                          token_type_ids=token_type_ids, tm=64)
    out = jax.block_until_ready(out)

    position_ids = jnp.broadcast_to(jnp.arange(S, dtype=jnp.int32)[None, :], (B, S))
    ref = _reference(input_ids, word_table, pos_table, ttyp_table, gamma, beta,
                     token_type_ids, position_ids)

    assert out.shape == (B, S, H)
    assert jnp.allclose(out, ref, atol=1e-5, rtol=1e-5), "mismatch vs reference"

    # TODO(synk): training-mode dropout (hidden_dropout_prob) not implemented; eval mode only.
    print("KERNEL_OK")
</pallas_src>

<mosaic_0001>
module attributes {stable_mosaic.version = 11 : i64} {
  func.func @_bert_embeddings_kernel(%arg0: i32, %arg1: memref<128xi32, #tpu.memory_space<smem>>, %arg2: memref<128xi32, #tpu.memory_space<smem>>, %arg3: memref<128xi32, #tpu.memory_space<smem>>, %arg4: memref<1000x128xf32, #tpu.memory_space<any>>, %arg5: memref<2x128xf32, #tpu.memory_space<any>>, %arg6: memref<128x128xf32, #tpu.memory_space<any>>, %arg7: memref<1x128xf32, #tpu.memory_space<vmem>>, %arg8: memref<1x128xf32, #tpu.memory_space<vmem>>, %arg9: memref<64x128xf32, #tpu.memory_space<vmem>>, %arg10: memref<64x128xf32, #tpu.memory_space<vmem>>, %arg11: memref<64x128xf32, #tpu.memory_space<vmem>>, %arg12: memref<64x128xf32, #tpu.memory_space<vmem>>, %arg13: memref<3x64x!tpu.dma_semaphore, #tpu.memory_space<semaphore_mem>>) attributes {dimension_semantics = [#tpu.dimension_semantics<parallel>], iteration_bounds = array<i64: 2>, scalar_prefetch = 3 : i64, scratch_operands = 4 : i64, tpu.core_type = #tpu.core_type<tc>, window_params = [{}, {}, {}, {pipeline_mode = #tpu.pipeline_mode<synchronous>, transform_indices = @transform_3, window_bounds = array<i64: 1, 128>}, {pipeline_mode = #tpu.pipeline_mode<synchronous>, transform_indices = @transform_4, window_bounds = array<i64: 1, 128>}, {transform_indices = @transform_5, window_bounds = array<i64: 64, 128>}]} {
    %c64_i32 = arith.constant 64 : i32
    %0 = arith.muli %arg0, %c64_i32 : i32
    %c0_i32 = arith.constant 0 : i32
    %c64_i32_0 = arith.constant 64 : i32
    %1 = arith.addi %c0_i32, %c64_i32_0 : i32
    %c1_i32 = arith.constant 1 : i32
    scf.for %arg14 = %c0_i32 to %1 step %c1_i32  : i32 {
      %c1_i32_21 = arith.constant 1 : i32
      %34 = arith.muli %arg14, %c1_i32_21 : i32
      %c0_i32_22 = arith.constant 0 : i32
      %35 = arith.addi %c0_i32_22, %34 : i32
      %36 = arith.addi %0, %35 : i32
      %37 = arith.index_cast %36 : i32 to index
      %38 = memref.load %arg1[%37] : memref<128xi32, #tpu.memory_space<smem>>
      %39 = arith.addi %0, %35 : i32
      %40 = arith.index_cast %39 : i32 to index
      %41 = memref.load %arg2[%40] : memref<128xi32, #tpu.memory_space<smem>>
      %42 = arith.addi %0, %35 : i32
      %43 = arith.index_cast %42 : i32 to index
      %44 = memref.load %arg3[%43] : memref<128xi32, #tpu.memory_space<smem>>
      %c0_i32_23 = arith.constant 0 : i32
      %c0_i32_24 = arith.constant 0 : i32
      %45 = tpu.memref_slice %arg4[%38, %c0_i32_24] : memref<1000x128xf32, #tpu.memory_space<any>> -> memref<1x128xf32, #tpu.memory_space<any>>
      %c0_i32_25 = arith.constant 0 : i32
      %46 = tpu.memref_slice %arg10[%35, %c0_i32_25] : memref<64x128xf32, #tpu.memory_space<vmem>> -> memref<1x128xf32, #tpu.memory_space<vmem>>
      %47 = tpu.memref_slice %arg13[%c0_i32_23, %35] : memref<3x64x!tpu.dma_semaphore, #tpu.memory_space<semaphore_mem>> -> memref<1x1x!tpu.dma_semaphore, #tpu.memory_space<semaphore_mem>>
      %48 = tpu.memref_squeeze %47 : memref<1x1x!tpu.dma_semaphore, #tpu.memory_space<semaphore_mem>> -> memref<!tpu.dma_semaphore, #tpu.memory_space<semaphore_mem>>
      tpu.enqueue_dma source(%45 : memref<1x128xf32, #tpu.memory_space<any>>) target(%46 : memref<1x128xf32, #tpu.memory_space<vmem>>) target_semaphore(%48 : memref<!tpu.dma_semaphore, #tpu.memory_space<semaphore_mem>>)
      %c1_i32_26 = arith.constant 1 : i32
      %c0_i32_27 = arith.constant 0 : i32
      %49 = tpu.memref_slice %arg5[%41, %c0_i32_27] : memref<2x128xf32, #tpu.memory_space<any>> -> memref<1x128xf32, #tpu.memory_space<any>>
      %c0_i32_28 = arith.constant 0 : i32
      %50 = tpu.memref_slice %arg11[%35, %c0_i32_28] : memref<64x128xf32, #tpu.memory_space<vmem>> -> memref<1x128xf32, #tpu.memory_space<vmem>>
      %51 = tpu.memref_slice %arg13[%c1_i32_26, %35] : memref<3x64x!tpu.dma_semaphore, #tpu.memory_space<semaphore_mem>> -> memref<1x1x!tpu.dma_semaphore, #tpu.memory_space<semaphore_mem>>
      %52 = tpu.memref_squeeze %51 : memref<1x1x!tpu.dma_semaphore, #tpu.memory_space<semaphore_mem>> -> memref<!tpu.dma_semaphore, #tpu.memory_space<semaphore_mem>>
      tpu.enqueue_dma source(%49 : memref<1x128xf32, #tpu.memory_space<any>>) target(%50 : memref<1x128xf32, #tpu.memory_space<vmem>>) target_semaphore(%52 : memref<!tpu.dma_semaphore, #tpu.memory_space<semaphore_mem>>)
      %c2_i32 = arith.constant 2 : i32
      %c0_i32_29 = arith.constant 0 : i32
      %53 = tpu.memref_slice %arg6[%44, %c0_i32_29] : memref<128x128xf32, #tpu.memory_space<any>> -> memref<1x128xf32, #tpu.memory_space<any>>
      %c0_i32_30 = arith.constant 0 : i32
      %54 = tpu.memref_slice %arg12[%35, %c0_i32_30] : memref<64x128xf32, #tpu.memory_space<vmem>> -> memref<1x128xf32, #tpu.memory_space<vmem>>
      %55 = tpu.memref_slice %arg13[%c2_i32, %35] : memref<3x64x!tpu.dma_semaphore, #tpu.memory_space<semaphore_mem>> -> memref<1x1x!tpu.dma_semaphore, #tpu.memory_space<semaphore_mem>>
      %56 = tpu.memref_squeeze %55 : memref<1x1x!tpu.dma_semaphore, #tpu.memory_space<semaphore_mem>> -> memref<!tpu.dma_semaphore, #tpu.memory_space<semaphore_mem>>
      tpu.enqueue_dma source(%53 : memref<1x128xf32, #tpu.memory_space<any>>) target(%54 : memref<1x128xf32, #tpu.memory_space<vmem>>) target_semaphore(%56 : memref<!tpu.dma_semaphore, #tpu.memory_space<semaphore_mem>>)
    }
    %c64_i32_1 = arith.constant 64 : i32
    %c0_i32_2 = arith.constant 0 : i32
    %c64_i32_3 = arith.constant 64 : i32
    %2 = arith.addi %c0_i32_2, %c64_i32_3 : i32
    %c1_i32_4 = arith.constant 1 : i32
    scf.for %arg14 = %c0_i32_2 to %2 step %c1_i32_4  : i32 {
      %c1_i32_21 = arith.constant 1 : i32
      %34 = arith.muli %arg14, %c1_i32_21 : i32
      %c0_i32_22 = arith.constant 0 : i32
      %35 = arith.addi %c0_i32_22, %34 : i32
      %c0_i32_23 = arith.constant 0 : i32
      %c0_i32_24 = arith.constant 0 : i32
      %c0_i32_25 = arith.constant 0 : i32
      %36 = tpu.memref_slice %arg4[%c0_i32_24, %c0_i32_25] : memref<1000x128xf32, #tpu.memory_space<any>> -> memref<1x128xf32, #tpu.memory_space<any>>
      %c0_i32_26 = arith.constant 0 : i32
      %37 = tpu.memref_slice %arg10[%35, %c0_i32_26] : memref<64x128xf32, #tpu.memory_space<vmem>> -> memref<1x128xf32, #tpu.memory_space<vmem>>
      %38 = tpu.memref_slice %arg13[%c0_i32_23, %35] : memref<3x64x!tpu.dma_semaphore, #tpu.memory_space<semaphore_mem>> -> memref<1x1x!tpu.dma_semaphore, #tpu.memory_space<semaphore_mem>>
      %39 = tpu.memref_squeeze %38 : memref<1x1x!tpu.dma_semaphore, #tpu.memory_space<semaphore_mem>> -> memref<!tpu.dma_semaphore, #tpu.memory_space<semaphore_mem>>
      tpu.wait_dma2 semaphore(%39 : memref<!tpu.dma_semaphore, #tpu.memory_space<semaphore_mem>>) src(%36 : memref<1x128xf32, #tpu.memory_space<any>>) dst(%37 : memref<1x128xf32, #tpu.memory_space<vmem>>)
      %c1_i32_27 = arith.constant 1 : i32
      %c0_i32_28 = arith.constant 0 : i32
      %c0_i32_29 = arith.constant 0 : i32
      %40 = tpu.memref_slice %arg5[%c0_i32_28, %c0_i32_29] : memref<2x128xf32, #tpu.memory_space<any>> -> memref<1x128xf32, #tpu.memory_space<any>>
      %c0_i32_30 = arith.constant 0 : i32
      %41 = tpu.memref_slice %arg11[%35, %c0_i32_30] : memref<64x128xf32, #tpu.memory_space<vmem>> -> memref<1x128xf32, #tpu.memory_space<vmem>>
      %42 = tpu.memref_slice %arg13[%c1_i32_27, %35] : memref<3x64x!tpu.dma_semaphore, #tpu.memory_space<semaphore_mem>> -> memref<1x1x!tpu.dma_semaphore, #tpu.memory_space<semaphore_mem>>
      %43 = tpu.memref_squeeze %42 : memref<1x1x!tpu.dma_semaphore, #tpu.memory_space<semaphore_mem>> -> memref<!tpu.dma_semaphore, #tpu.memory_space<semaphore_mem>>
      tpu.wait_dma2 semaphore(%43 : memref<!tpu.dma_semaphore, #tpu.memory_space<semaphore_mem>>) src(%40 : memref<1x128xf32, #tpu.memory_space<any>>) dst(%41 : memref<1x128xf32, #tpu.memory_space<vmem>>)
      %c2_i32 = arith.constant 2 : i32
      %c0_i32_31 = arith.constant 0 : i32
      %c0_i32_32 = arith.constant 0 : i32
      %44 = tpu.memref_slice %arg6[%c0_i32_31, %c0_i32_32] : memref<128x128xf32, #tpu.memory_space<any>> -> memref<1x128xf32, #tpu.memory_space<any>>
      %c0_i32_33 = arith.constant 0 : i32
      %45 = tpu.memref_slice %arg12[%35, %c0_i32_33] : memref<64x128xf32, #tpu.memory_space<vmem>> -> memref<1x128xf32, #tpu.memory_space<vmem>>
      %46 = tpu.memref_slice %arg13[%c2_i32, %35] : memref<3x64x!tpu.dma_semaphore, #tpu.memory_space<semaphore_mem>> -> memref<1x1x!tpu.dma_semaphore, #tpu.memory_space<semaphore_mem>>
      %47 = tpu.memref_squeeze %46 : memref<1x1x!tpu.dma_semaphore, #tpu.memory_space<semaphore_mem>> -> memref<!tpu.dma_semaphore, #tpu.memory_space<semaphore_mem>>
      tpu.wait_dma2 semaphore(%47 : memref<!tpu.dma_semaphore, #tpu.memory_space<semaphore_mem>>) src(%44 : memref<1x128xf32, #tpu.memory_space<any>>) dst(%45 : memref<1x128xf32, #tpu.memory_space<vmem>>)
    }
    %c64_i32_5 = arith.constant 64 : i32
    %c0 = arith.constant 0 : index
    %c0_6 = arith.constant 0 : index
    %3 = vector.load %arg10[%c0, %c0_6] : memref<64x128xf32, #tpu.memory_space<vmem>>, vector<64x128xf32>
    %c0_7 = arith.constant 0 : index
    %c0_8 = arith.constant 0 : index
    %4 = vector.load %arg11[%c0_7, %c0_8] : memref<64x128xf32, #tpu.memory_space<vmem>>, vector<64x128xf32>
    %5 = arith.addf %3, %4 : vector<64x128xf32>
    %c0_9 = arith.constant 0 : index
    %c0_10 = arith.constant 0 : index
    %6 = vector.load %arg12[%c0_9, %c0_10] : memref<64x128xf32, #tpu.memory_space<vmem>>, vector<64x128xf32>
    %7 = arith.addf %5, %6 : vector<64x128xf32>
    %cst = arith.constant dense<0.000000e+00> : vector<64xf32>
    %8 = vector.multi_reduction <add>, %7, %cst [1] : vector<64x128xf32> to vector<64xf32>
    %9 = vector.shape_cast %8 : vector<64xf32> to vector<64x1xf32>
    %10 = arith.mulf %7, %7 : vector<64x128xf32>
    %cst_11 = arith.constant dense<0.000000e+00> : vector<64xf32>
    %11 = vector.multi_reduction <add>, %10, %cst_11 [1] : vector<64x128xf32> to vector<64xf32>
    %12 = vector.shape_cast %11 : vector<64xf32> to vector<64x1xf32>
    %cst_12 = arith.constant 7.812500e-03 : f32
    %13 = vector.broadcast %cst_12 : f32 to vector<64x1xf32>
    %14 = arith.mulf %9, %13 : vector<64x1xf32>
    %cst_13 = arith.constant 7.812500e-03 : f32
    %15 = vector.broadcast %cst_13 : f32 to vector<64x1xf32>
    %16 = arith.mulf %12, %15 : vector<64x1xf32>
    %17 = arith.mulf %14, %14 : vector<64x1xf32>
    %18 = arith.subf %16, %17 : vector<64x1xf32>
    %cst_14 = arith.constant 9.99999996E-13 : f32
    %19 = vector.broadcast %cst_14 : f32 to vector<64x1xf32>
    %20 = arith.addf %18, %19 : vector<64x1xf32>
    %21 = math.rsqrt %20 : vector<64x1xf32>
    %c0_15 = arith.constant 0 : index
    %c0_16 = arith.constant 0 : index
    %22 = vector.load %arg7[%c0_15, %c0_16] : memref<1x128xf32, #tpu.memory_space<vmem>>, vector<1x128xf32>
    %23 = vector.broadcast %21 : vector<64x1xf32> to vector<64x128xf32>
    %24 = vector.broadcast %22 : vector<1x128xf32> to vector<64x128xf32>
    %25 = arith.mulf %23, %24 : vector<64x128xf32>
    %c0_17 = arith.constant 0 : index
    %c0_18 = arith.constant 0 : index
    %26 = vector.load %arg8[%c0_17, %c0_18] : memref<1x128xf32, #tpu.memory_space<vmem>>, vector<1x128xf32>
    %27 = vector.broadcast %14 : vector<64x1xf32> to vector<64x128xf32>
    %28 = arith.mulf %27, %25 : vector<64x128xf32>
    %29 = vector.broadcast %26 : vector<1x128xf32> to vector<64x128xf32>
    %30 = arith.subf %29, %28 : vector<64x128xf32>
    %31 = arith.mulf %7, %25 : vector<64x128xf32>
    %32 = arith.addf %31, %30 : vector<64x128xf32>
    %c0_19 = arith.constant 0 : index
    %c0_20 = arith.constant 0 : index
    %33 = vector.load %arg9[%c0_19, %c0_20] : memref<64x128xf32, #tpu.memory_space<vmem>>, vector<64x128xf32>
    tpu.vector_store %arg9[%c0_19, %c0_20], %32 {strides = array<i32>} : memref<64x128xf32, #tpu.memory_space<vmem>>, vector<64x128xf32>,
    return
  }
  func.func @transform_3(%arg0: i32, %arg1: memref<128xi32, #tpu.memory_space<smem>>, %arg2: memref<128xi32, #tpu.memory_space<smem>>, %arg3: memref<128xi32, #tpu.memory_space<smem>>) -> (i32, i32) {
    %c0_i32 = arith.constant 0 : i32
    %c0_i32_0 = arith.constant 0 : i32
    %c0_i32_1 = arith.constant 0 : i32
    return %c0_i32, %c0_i32_0 : i32, i32
  }
  func.func @transform_4(%arg0: i32, %arg1: memref<128xi32, #tpu.memory_space<smem>>, %arg2: memref<128xi32, #tpu.memory_space<smem>>, %arg3: memref<128xi32, #tpu.memory_space<smem>>) -> (i32, i32) {
    %c0_i32 = arith.constant 0 : i32
    %c0_i32_0 = arith.constant 0 : i32
    %c0_i32_1 = arith.constant 0 : i32
    return %c0_i32, %c0_i32_0 : i32, i32
  }
  func.func @transform_5(%arg0: i32, %arg1: memref<128xi32, #tpu.memory_space<smem>>, %arg2: memref<128xi32, #tpu.memory_space<smem>>, %arg3: memref<128xi32, #tpu.memory_space<smem>>) -> (i32, i32) {
    %c0_i32 = arith.constant 0 : i32
    %c0_i32_0 = arith.constant 0 : i32
    return %arg0, %c0_i32 : i32, i32
  }
}

</mosaic_0001>

<bundles_post_ra>
// kernel: tpu_custom_call.1
= control target key start
LH: loop header
LB: loop body
LE: loop exit
PB: predicated region body
PF: predicated region fallthrough
CT: control target
= control target key end

     0   :  { %s2325_s27 = smov [#allocation7]   ;;  %s2638_s0 = inlined_call_operand.hbm [shape: s32[128], index: 0, kind: input, shape index: {}]   ;;  %s2639_s3 = inlined_call_operand.hbm [shape: f32[1000,128], index: 3, kind: input, shape index: {}]   ;;  %s2640_s4 = inlined_call_operand.vmem [shape: f32[2,128], index: 4, kind: input, shape index: {}]   ;;  %s2641_s5 = inlined_call_operand.hbm [shape: f32[128,128], index: 5, kind: input, shape index: {}]   ;;  %s2642_s6 = inlined_call_operand.vmem [shape: f32[1,128], index: 6, kind: input, shape index: {}]   ;;  %s2643_s7 = inlined_call_operand.vmem [shape: f32[1,128], index: 7, kind: input, shape index: {}]   ;;  %s2644_s8 = inlined_call_operand.hbm [shape: f32[128,128], index: 8, kind: output, shape index: {}]   ;;  %s2645_s1 = inlined_call_operand.vmem [shape: s32[128], index: 1, kind: input, shape index: {}]   ;;  %s2646_s2 = inlined_call_operand.hbm [shape: s32[128], index: 2, kind: input, shape index: {}]  }
   0x1   :  { %14 = dma.hbm_to_smem %s2638_s0, 16, %s2325_s27, [#allocation6] }
   0x2   :  { %s15_s10 = sshll.u32 %s2645_s1, 4  ;;  %s16_s10 = int_to_ptr.vmem [resolvable:$true] %s15_s10 }
   0x3   :  { %s2175_s11 = scalar_lea.vmem %s16_s10, 16  ;;  %p2180_p1 = scmp.lt.s32.totalorder %s16_s10, %s16_s10 }
   0x4   :  { %p2176_p0 = scmp.ne.s32.totalorder %s16_s10, %s2175_s11  ;;  %p2181_p2 = scmp.lt.s32.totalorder %s2175_s11, %s2175_s11 }
   0x6   :  { %p2182_p3 = por %p2181_p2, %p2180_p1 }
   0x8   :  { %p2183_p4 = pnand %p2182_p3, %p2176_p0 }
   0xa   :  { %2186 = shalt.err (!%p2183_p4)  }
   0xb   :  { %s2326_s12 = smov [#allocation8]   ;;  %s2327_s13 = smov [#allocation9]  }
   0xc   :  { %18 = dma.vmem_to_smem %s16_s10, 16, %s2326_s12, [#allocation6] }
   0xd   :  { %20 = dma.hbm_to_smem %s2646_s2, 16, %s2327_s13, [#allocation6] }
   0xe   :  { %2289 = dma.done.wait [#allocation6], 48 }
   0xf   :  { %2290 = vsyncadd [#allocation6], 4294967248 }
  0x10   :  { %22 = sfence }
  0x11   :  { %23 = vsyncpa [#allocation11], 0 }
  0x12   :  { %25 = vsyncpa [#allocation11 + $0x1], 0  ;;  %s2387_s0 = smov 0   ;;  %s2389_s1 = smov 0  }
  0x13   :  { %s2391_s16 = smov 0   ;;  %s2393_s17 = smov 0  }
  0x14 LB: > { %2652 = sst [smem:[#allocation24_spill]] %s2311_s16  ;;  %s2408_s2 = sadd.s32 4294967295, %s2315_s17   ;;  %s2315_s17 = sphi %s2393_s17, %s2661_s17   ;;  %s2311_s16 = sphi %s2391_s16, %s2663_s16   ;;  %s2307_s1 = sphi %s2389_s1, %s2665_s1   ;;  %s2303_s0 = sphi %s2387_s0, %s2664_s0  }
  0x15   : > { %s1884_s18 = sadd.s32 4294967294, %s2315_s17   ;;  %s2412_s19 = sadd.s32 1, %s2315_s17  }
  0x16   : > { %2653 = sst [smem:[#allocation25_spill]] %s2412_s19  ;;  %s80_s20 = sadd.s32 1, %s2311_s16 }
  0x17   : > { %s77_s21 = ssub.s32 %s2315_s17, %s2412_s19  ;;  %p90_p5 = scmp.ne.s32.totalorder %s2311_s16, %s2307_s1 }
  0x18   : > { %p78_p6 = scmp.eq.s32.totalorder %s77_s21, 0  ;;  %p91_p7 = scmp.eq.s32.totalorder %s2408_s2, 1 }
  0x19   : > { %p96_p8 = scmp.ne.s32.totalorder %s2307_s1, %s2303_s0  ;;  %p97_p9 = scmp.eq.s32.totalorder %s1884_s18, 1 }
  0x1a   : > { %s2423_s22 = scalar_select %p78_p6, %s2311_s16, %s80_s20  }
  0x1b   : > { %p2425_p10 = por %p91_p7, %p90_p5  ;;  %p2429_p11 = por %p97_p9, %p96_p8 }
  0x1c   : > { %2654 = sst [smem:[#allocation26_spill]] %s2423_s22  ;;  %p1886_p12 = scmp.ge.s32.totalorder %s2315_s17, 1 }
  0x1d   : > { %s2656_s24 = scalar_select %p2429_p11, 1, 0 }
  0x1e   : > { %p121_p13 = scmp.lt.s32.totalorder %s2315_s17, 3 }
  0x1f   : > { %2657 = sst [smem:[#allocation27_spill]] %s2656_s24 }
  0x20   : > { %p122_p0 = pnand %p1886_p12, %p121_p13 }
  0x21   : > { %s2647_s25 = sand.u32 (!%p122_p0), 1, %s2307_s1   ;;  %s2441_s29 = smov (!%p122_p0), 0  }
  0x22   : > { %125 = sbr.rel (%p122_p0) target bundleno = 324 (0x144), region = 28  ;;  %s1887_s27 = sshll.u32 (!%p122_p0), %s2647_s25, 6 }
  0x23   : > { %s2439_s28 = scalar_lea.vmem (!%p122_p0), [#allocation10], %s1887_s27 }
  0x27 LB: >> { %s2658_s26 = sshll.u32 %s2408_s2, 6  ;;  %s152_s11 = scalar_lea.vmem [#allocation2], %s2319_s29  ;;  %s2319_s29 = sphi %s2441_s29, %s145_s29  }
  0x28   : >> { %s146_s30 = sadd.s32 %s2319_s29, %s2658_s26  ;;  %s161_s12 = sshll.u32 %s152_s11, 4  ;;  %s162_s12 = int_to_ptr.vmem [resolvable:$true] %s161_s12 }
  0x29   : >> { %s147_s9 = sld [smem:[#allocation7 + %s146_s30]]  ;;  %s2453_s13 = scalar_lea.sflag [#allocation5], %s2319_s29 }
  0x2a   : >> { %s2449_s10 = sld [smem:[#allocation9 + %s146_s30]]  ;;  %s1830_s14 = scalar_lea.sflag %s2453_s13, 64 [#allocation5] }
  0x2b   : >> { %s148_s15 = sld [smem:[#allocation8 + %s146_s30]]  ;;  %s2197_s16 = scalar_lea.hbm %s2639_s3, 16000 }
  0x2f   : >> { %s1889_s18 = sshll.u32 %s147_s9, 4 }
  0x30   : >> { %s151_s27 = scalar_lea.hbm %s2639_s3, %s1889_s18 }
  0x31   : >> { %s2195_s25 = scalar_lea.hbm %s151_s27, 16  ;;  %p2198_p2 = scmp.lt.s32.totalorder %s151_s27, %s2639_s3 }
  0x32   : >> { %p2196_p1 = scmp.ne.s32.totalorder %s151_s27, %s2195_s25  ;;  %p2199_p3 = scmp.lt.s32.totalorder %s2197_s16, %s2195_s25 }
  0x34   : >> { %p2200_p4 = por %p2199_p3, %p2198_p2 }
  0x36   : >> { %p2201_p5 = pnand %p2200_p4, %p2196_p1 }
  0x38   : >> { %2204 = shalt.err (!%p2201_p5)  }
  0x39   : >> { %s2205_s30 = scalar_lea.vmem %s162_s12, 16  ;;  %s2328_s9 = smov [#allocation2]  }
  0x3a   : >> { %p2206_p6 = scmp.ne.s32.totalorder %s162_s12, %s2205_s30  ;;  %s2207_s11 = sshll.u32 %s2328_s9, 4  ;;  %s2208_s11 = int_to_ptr.vmem [resolvable:$false] %s2207_s11 }
  0x3b   : >> { %s2209_s18 = scalar_lea.vmem %s2208_s11, 1024  ;;  %p2210_p7 = scmp.lt.s32.totalorder %s162_s12, %s2208_s11 }
  0x3c   : >> { %p2211_p8 = scmp.lt.s32.totalorder %s2209_s18, %s2205_s30 }
  0x3e   : >> { %p2212_p9 = por %p2211_p8, %p2210_p7 }
  0x40   : >> { %p2213_p12 = pnand %p2212_p9, %p2206_p6 }
  0x42   : >> { %2216 = shalt.err (!%p2213_p12)  }
  0x43   : >> { %164 = dma.hbm_to_vmem [thread:$0]  %s151_s27, 16, %s162_s12, %s2453_s13 }
  0x44   : >> { %s165_s16 = scalar_lea.vmem %s2640_s4, %s148_s15  ;;  %s166_s24 = scalar_lea.vmem [#allocation3], %s2319_s29 }
  0x45   : >> { %v187_v0 = vld [vmem:[%s165_s16] sm:$0x1] }
  0x46   : >> { %188 = vst [vmem:[%s166_s24] sm:$0x1] %v187_v0 }
  0x47   : >> { %214 = vsyncadd %s1830_s14, 16  ;;  %s1890_s25 = sshll.u32 %s2449_s10, 4  ;;  %s1837_s30 = scalar_lea.sflag %s2453_s13, 128 [#allocation5] }
  0x48   : >> { %s216_s21 = scalar_lea.hbm %s2641_s5, %s1890_s25  ;;  %s217_s9 = scalar_lea.vmem [#allocation4], %s2319_s29 }
  0x49   : >> { %s227_s11 = sshll.u32 %s217_s9, 4  ;;  %s2217_s12 = scalar_lea.hbm %s216_s21, 16  ;;  %s228_s11 = int_to_ptr.vmem [resolvable:$true] %s227_s11 }
  0x4a   : >> { %p2218_p13 = scmp.ne.s32.totalorder %s216_s21, %s2217_s12  ;;  %s2219_s18 = scalar_lea.hbm %s2641_s5, 2048 }
  0x4b   : >> { %p2220_p0 = scmp.lt.s32.totalorder %s216_s21, %s2641_s5  ;;  %p2221_p1 = scmp.lt.s32.totalorder %s2219_s18, %s2217_s12 }
  0x4d   : >> { %p2222_p2 = por %p2221_p1, %p2220_p0 }
  0x4f   : >> { %p2223_p3 = pnand %p2222_p2, %p2218_p13 }
  0x51   : >> { %2226 = shalt.err (!%p2223_p3)  }
  0x52   : >> { %s2227_s10 = scalar_lea.vmem %s228_s11, 16  ;;  %s2329_s13 = smov [#allocation4]  }
  0x53   : >> { %p2228_p4 = scmp.ne.s32.totalorder %s228_s11, %s2227_s10  ;;  %s2229_s22 = sshll.u32 %s2329_s13, 4  ;;  %s2230_s22 = int_to_ptr.vmem [resolvable:$false] %s2229_s22 }
  0x54   : >> { %s2231_s16 = scalar_lea.vmem %s2230_s22, 1024  ;;  %p2232_p5 = scmp.lt.s32.totalorder %s228_s11, %s2230_s22 }
  0x55   : >> { %p2233_p6 = scmp.lt.s32.totalorder %s2231_s16, %s2227_s10 }
  0x57   : >> { %p2234_p7 = por %p2233_p6, %p2232_p5 }
  0x59   : >> { %p2235_p8 = pnand %p2234_p7, %p2228_p4 }
  0x5b   : >> { %2238 = shalt.err (!%p2235_p8)  }
  0x5c   : >> { %230 = dma.hbm_to_vmem [thread:$0]  %s216_s21, 16, %s228_s11, %s1837_s30 }
  0x5d   : >> { %s145_s29 = sadd.s32 1, %s2319_s29  }
  0x5e   : >> { %p142_p9 = scmp.ge.s32.totalorder %s145_s29, 64  }
  0x5f   : > { %s2321_s24 = smov (%p142_p9), 0  }
  0x60   : > { %144 = sbr.rel (!%p142_p9) target bundleno = 39 (0x27), region = 325 }
  0x65 LB: >> { %s237_s25 = scalar_lea.sflag [#allocation5], %s2323_s24  ;;  %s2323_s24 = sphi %s2321_s24, %s236_s24  }
  0x66   : >> { %2291 = dma.done.wait %s237_s25, 16 }
  0x67   : >> { %2292 = vsyncadd %s237_s25, 4294967280  ;;  %s1840_s26 = scalar_lea.sflag %s237_s25, 64 [#allocation5] }
  0x68   : >> { %2293 = dma.done.wait %s1840_s26, 16 }
  0x69   : >> { %2294 = vsyncadd %s1840_s26, 4294967280  ;;  %s1842_s20 = scalar_lea.sflag %s237_s25, 128 [#allocation5] }
  0x6a   : >> { %2295 = dma.done.wait %s1842_s20, 16 }
  0x6b   : >> { %2296 = vsyncadd %s1842_s20, 4294967280  ;;  %s236_s24 = sadd.s32 1, %s2323_s24  }
  0x6c   : >> { %p233_p12 = scmp.ge.s32.totalorder %s236_s24, 64  }
  0x6d   : > { %v251_v1 = vld [vmem:[#allocation2 + $0x10] sm:$0xff] (%p233_p12)  ;;  %v249_v5 = vld [vmem:[#allocation2] sm:$0xff] (%p233_p12)  ;;  %v252_v9 = vld [vmem:[#allocation2 + $0x18] sm:$0xff] (%p233_p12)  ;;  %s2090_s11 = sshll.u32 (%p233_p12), %s2408_s2, 10  ;;  %s453_s12 = sshll.u32 (%p233_p12), %s2439_s28, 4  ;;  %s2592_s12 = int_to_ptr.vmem [resolvable:$true] %s453_s12 }
  0x6e   : > { %235 = sbr.rel (!%p233_p12) target bundleno = 101 (0x65), region = 336  ;;  %v259_v2 = vld [vmem:[#allocation3 + $0x10] sm:$0xff] (%p233_p12)  ;;  %v257_v6 = vld [vmem:[#allocation3] sm:$0xff] (%p233_p12)  ;;  %v260_v10 = vld [vmem:[#allocation3 + $0x18] sm:$0xff] (%p233_p12)  ;;  %s2590_s18 = scalar_lea.hbm (%p233_p12), %s2644_s8, %s2090_s11 }
  0x6f   : > { %v275_v3 = vld [vmem:[#allocation4 + $0x10] sm:$0xff] (%p233_p12)  ;;  %v267_v4 = vadd.f32 (%p233_p12), %v259_v2, %v251_v1  ;;  %v273_v7 = vld [vmem:[#allocation4] sm:$0xff] (%p233_p12)  ;;  %v265_v8 = vadd.f32 (%p233_p12), %v257_v6, %v249_v5  ;;  %v276_v11 = vld [vmem:[#allocation4 + $0x18] sm:$0xff] (%p233_p12)  ;;  %v268_v13 = vadd.f32 (%p233_p12), %v260_v10, %v252_v9  ;;  %s2659_s2 = sand.u32 (%p233_p12), 1, %s2307_s1   ;;  %s2239_s14 = scalar_lea.vmem (%p233_p12), %s2592_s12, 1024 }
  0x70   : > { %v250_v14 = vld [vmem:[#allocation2 + $0x8] sm:$0xff] (%p233_p12)  ;;  %v253_v23 = vld [vmem:[#allocation2 + $0x20] sm:$0xff] (%p233_p12)  ;;  %v256_v28 = vld [vmem:[#allocation2 + $0x38] sm:$0xff] (%p233_p12)  ;;  %s2598_s19 = scalar_lea.sflag (%p233_p12), [#allocation11], %s2659_s2  ;;  %p2240_p13 = scmp.ne.s32.totalorder (%p233_p12), %s2592_s12, %s2239_s14 }
  0x71   : > { %v2485_v12 = vadd.f32 (%p233_p12), %v275_v3, %v267_v4  ;;  %v258_v15 = vld [vmem:[#allocation3 + $0x8] sm:$0xff] (%p233_p12)  ;;  %v2487_v17 = vadd.f32 (%p233_p12), %v273_v7, %v265_v8  ;;  %v2490_v21 = vadd.f32 (%p233_p12), %v276_v11, %v268_v13  ;;  %v261_v24 = vld [vmem:[#allocation3 + $0x20] sm:$0xff] (%p233_p12)  ;;  %v264_v29 = vld [vmem:[#allocation3 + $0x38] sm:$0xff] (%p233_p12)  ;;  %s2330_s10 = smov (%p233_p12), [#allocation10]  }
  0x72   : > { %v274_v16 = vld [vmem:[#allocation4 + $0x8] sm:$0xff] (%p233_p12)  ;;  %v266_v18 = vadd.f32 (%p233_p12), %v258_v15, %v250_v14  ;;  %v269_v27 = vadd.f32 (%p233_p12), %v261_v24, %v253_v23  ;;  %v277_v30 = vld [vmem:[#allocation4 + $0x20] sm:$0xff] (%p233_p12)  ;;  %v255_v31 = vld [vmem:[#allocation2 + $0x30] sm:$0xff] (%p233_p12)  ;;  %v272_v34 = vadd.f32 (%p233_p12), %v264_v29, %v256_v28  ;;  %p2241_p0 = pnand (%p233_p12), %p2240_p13, %p2425_p10  ;;  %s2243_s13 = sshll.u32 (%p233_p12), %s2330_s10, 4  ;;  %s2244_s13 = int_to_ptr.vmem [resolvable:$false] %s2243_s13 }
  0x73   : > { %v254_v19 = vld [vmem:[#allocation2 + $0x28] sm:$0xff]  ;;  %293 = vadd.xlane.f32.xlu1 %v2485_v12  ;;  %289 = vadd.xlane.f32.xlu0 %v2487_v17  ;;  %v263_v32 = vld [vmem:[#allocation3 + $0x30] sm:$0xff]  ;;  %v280_v36 = vld [vmem:[#allocation4 + $0x38] sm:$0xff]  ;;  %v305_v42 = vmul.f32 %v2487_v17, %v2487_v17  ;;  %v308_v43 = vmul.f32 %v2490_v21, %v2490_v21  ;;  %v307_v44 = vmul.f32 %v2485_v12, %v2485_v12  ;;  %s2245_s22 = scalar_lea.vmem %s2244_s13, 2048  ;;  %p2246_p2 = scmp.lt.s32.totalorder %s2592_s12, %s2244_s13 }
  0x74   : > { %v262_v20 = vld [vmem:[#allocation3 + $0x28] sm:$0xff]  ;;  %v2493_v25 = vadd.f32 %v274_v16, %v266_v18  ;;  %v2499_v35 = vadd.f32 %v277_v30, %v269_v27  ;;  %v271_v37 = vadd.f32 %v263_v32, %v255_v31  ;;  %v279_v38 = vld [vmem:[#allocation4 + $0x30] sm:$0xff]  ;;  %v2502_v39 = vadd.f32 %v280_v36, %v272_v34  ;;  %p2242_p1 = pneg %p2241_p0  ;;  %p2247_p3 = scmp.lt.s32.totalorder %s2245_s22, %s2239_s14 }
  0x75   : > { %v270_v22 = vadd.f32 %v262_v20, %v254_v19  ;;  %v278_v26 = vld [vmem:[#allocation4 + $0x28] sm:$0xff] }
  0x76   : > { %v2505_v40 = vadd.f32 %v279_v38, %v271_v37  ;;  %v306_v41 = vmul.f32 %v2493_v25, %v2493_v25  ;;  %v309_v46 = vmul.f32 %v2499_v35, %v2499_v35  ;;  %v312_v47 = vmul.f32 %v2502_v39, %v2502_v39  ;;  %p2248_p4 = por %p2247_p3, %p2246_p2 }
  0x77   : > { %295 = vadd.xlane.f32.xlu1 %v2490_v21  ;;  %v2496_v33 = vadd.f32 %v278_v26, %v270_v22  ;;  %291 = vadd.xlane.f32.xlu0 %v2493_v25 }
  0x78   : > { %v311_v48 = vmul.f32 %v2505_v40, %v2505_v40  ;;  %p2249_p5 = pnand %p2248_p4, %p2242_p1 }
  0x79   : > { %v310_v45 = vmul.f32 %v2496_v33, %v2496_v33 }
  0x7b   : > { %299 = vadd.xlane.f32.xlu1 %v2496_v33  ;;  %297 = vadd.xlane.f32.xlu0 %v2499_v35 }
  0x7f   : > { %303 = vadd.xlane.f32.xlu1 %v2502_v39  ;;  %301 = vadd.xlane.f32.xlu0 %v2505_v40 }
  0x83   : > { %315 = vadd.xlane.f32.xlu1 %v306_v41  ;;  %313 = vadd.xlane.f32.xlu0 %v305_v42 }
  0x87   : > { %319 = vadd.xlane.f32.xlu1 %v308_v43  ;;  %317 = vadd.xlane.f32.xlu0 %v307_v44 }
  0x8b   : > { %323 = vadd.xlane.f32.xlu1 %v310_v45  ;;  %321 = vadd.xlane.f32.xlu0 %v309_v46 }
  0x8f   : > { %327 = vadd.xlane.f32.xlu1 %v312_v47  ;;  %325 = vadd.xlane.f32.xlu0 %v311_v48  ;;  %v1891_v48 = vld [vmem:[%s2642_s6] ss:$0 sm:$0xff] }
  0xfc   : > { %v294_v49 = vpop.xlane.xlu1 %293  ;;  %v290_v50 = vpop.xlane.xlu0 %289 }
  0xfd   : > { %v2527_v58 = vmul.f32 0.0078125, %v290_v50  ;;  %v2533_v0 = vmul.f32 0.0078125, %v294_v49 }
  0xff   : > { %v345_v1 = vmul.f32 %v2527_v58, %v2527_v58  ;;  %v347_v11 = vmul.f32 %v2533_v0, %v2533_v0 }
 0x100   : > { %v296_v51 = vpop.xlane.xlu1 %295  ;;  %v292_v52 = vpop.xlane.xlu0 %291 }
 0x101   : > { %v2525_v56 = vmul.f32 0.0078125, %v292_v52  ;;  %v2529_v60 = vmul.f32 0.0078125, %v296_v51 }
 0x103   : > { %v346_v61 = vmul.f32 %v2525_v56, %v2525_v56  ;;  %v348_v6 = vmul.f32 %v2529_v60, %v2529_v60 }
 0x104   : > { %v300_v53 = vpop.xlane.xlu1 %299  ;;  %v298_v54 = vpop.xlane.xlu0 %297 }
 0x105   : > { %v2539_v7 = vmul.f32 0.0078125, %v300_v53  ;;  %v2543_v13 = vmul.f32 0.0078125, %v298_v54  ;;  %v1892_v53 = vld [vmem:[%s2643_s7] ss:$0 sm:$0xff] }
 0x107   : > { %v350_v20 = vmul.f32 %v2539_v7, %v2539_v7  ;;  %v349_v27 = vmul.f32 %v2543_v13, %v2543_v13 }
 0x108   : > { %v304_v55 = vpop.xlane.xlu1 %303  ;;  %v302_v57 = vpop.xlane.xlu0 %301 }
 0x109   : > { %v2547_v22 = vmul.f32 0.0078125, %v304_v55  ;;  %v2551_v28 = vmul.f32 0.0078125, %v302_v57 }
 0x10b   : > { %v352_v36 = vmul.f32 %v2547_v22, %v2547_v22  ;;  %v351_v42 = vmul.f32 %v2551_v28, %v2551_v28 }
 0x10c   : > { %v316_v59 = vpop.xlane.xlu1 %315  ;;  %v314_v63 = vpop.xlane.xlu0 %313 }
 0x10d   : > { %v338_v62 = vmul.f32 0.0078125, %v316_v59  ;;  %v337_v2 = vmul.f32 0.0078125, %v314_v63 }
 0x10f   : > { %v354_v3 = vsub.f32 %v338_v62, %v346_v61  ;;  %v353_v4 = vsub.f32 %v337_v2, %v345_v1 }
 0x110   : > { %v320_v5 = vpop.xlane.xlu1 %319  ;;  %v318_v10 = vpop.xlane.xlu0 %317 }
 0x111   : > { %v362_v8 = vadd.f32 1e-12, %v354_v3  ;;  %v340_v9 = vmul.f32 0.0078125, %v320_v5  ;;  %v361_v14 = vadd.f32 1e-12, %v353_v4  ;;  %v339_v15 = vmul.f32 0.0078125, %v318_v10 }
 0x113   : > { %2151 = vrsqrt.f32 %v362_v8  ;;  %v356_v16 = vsub.f32 %v340_v9, %v348_v6  ;;  %v355_v18 = vsub.f32 %v339_v15, %v347_v11 }
 0x114   : > { %2153 = vrsqrt.f32 %v361_v14  ;;  %v324_v19 = vpop.xlane.xlu1 %323  ;;  %v322_v26 = vpop.xlane.xlu0 %321 }
 0x115   : > { %v364_v23 = vadd.f32 1e-12, %v356_v16  ;;  %v342_v24 = vmul.f32 0.0078125, %v324_v19  ;;  %v363_v29 = vadd.f32 1e-12, %v355_v18  ;;  %v341_v30 = vmul.f32 0.0078125, %v322_v26 }
 0x117   : > { %2155 = vrsqrt.f32 %v364_v23  ;;  %v358_v31 = vsub.f32 %v342_v24, %v350_v20  ;;  %v357_v32 = vsub.f32 %v341_v30, %v349_v27 }
 0x118   : > { %2157 = vrsqrt.f32 %v363_v29  ;;  %v328_v34 = vpop.xlane.xlu1 %327  ;;  %v326_v41 = vpop.xlane.xlu0 %325 }
 0x119   : > { %v366_v37 = vadd.f32 1e-12, %v358_v31  ;;  %v344_v38 = vmul.f32 0.0078125, %v328_v34  ;;  %v365_v43 = vadd.f32 1e-12, %v357_v32  ;;  %v343_v44 = vmul.f32 0.0078125, %v326_v41 }
 0x11b   : > { %2159 = vrsqrt.f32 %v366_v37  ;;  %v360_v45 = vsub.f32 %v344_v38, %v352_v36  ;;  %v359_v46 = vsub.f32 %v343_v44, %v351_v42 }
 0x11c   : > { %2161 = vrsqrt.f32 %v365_v43 }
 0x11d   : > { %v368_v47 = vadd.f32 1e-12, %v360_v45  ;;  %v367_v49 = vadd.f32 1e-12, %v359_v46 }
 0x11f   : > { %2163 = vrsqrt.f32 %v368_v47 }
 0x120   : > { %v2152_v50 = vpop.eup %2151  ;;  %2165 = vrsqrt.f32 %v367_v49 }
 0x121   : > { %v2154_v51 = vpop.eup %2153  ;;  %v385_v52 = vmul.f32 %v2152_v50, %v1891_v48 }
 0x122   : > { %v384_v54 = vmul.f32 %v2154_v51, %v1891_v48 }
 0x123   : > { %v394_v55 = vmul.f32 %v385_v52, %v2525_v56  ;;  %v416_v63 = vmul.f32 %v385_v52, %v2493_v25 }
 0x124   : > { %v2156_v57 = vpop.eup %2155  ;;  %v393_v59 = vmul.f32 %v384_v54, %v2527_v58  ;;  %v415_v3 = vmul.f32 %v384_v54, %v2487_v17 }
 0x125   : > { %v2158_v61 = vpop.eup %2157  ;;  %v408_v62 = vsub.f32 %v1892_v53, %v394_v55  ;;  %v387_v1 = vmul.f32 %v2156_v57, %v1891_v48 }
 0x126   : > { %v407_v2 = vsub.f32 %v1892_v53, %v393_v59  ;;  %v386_v4 = vmul.f32 %v2158_v61, %v1891_v48 }
 0x127   : > { %v424_v5 = vadd.f32 %v416_v63, %v408_v62  ;;  %v396_v6 = vmul.f32 %v387_v1, %v2529_v60  ;;  %v418_v11 = vmul.f32 %v387_v1, %v2490_v21 }
 0x128   : > { %v2160_v8 = vpop.eup %2159  ;;  %v423_v9 = vadd.f32 %v415_v3, %v407_v2  ;;  %v395_v56 = vmul.f32 %v386_v4, %v2533_v0  ;;  %v417_v17 = vmul.f32 %v386_v4, %v2485_v12 }
 0x129   : > { %v2162_v10 = vpop.eup %2161  ;;  %432 = vst [vmem:[%s2439_s28 + $0x8] sm:$0xff] %v424_v5  ;;  %v410_v58 = vsub.f32 %v1892_v53, %v396_v6  ;;  %v389_v25 = vmul.f32 %v2160_v8, %v1891_v48 }
 0x12a   : > { %431 = vst [vmem:[%s2439_s28] sm:$0xff] %v423_v9  ;;  %v409_v14 = vsub.f32 %v1892_v53, %v395_v56  ;;  %v388_v15 = vmul.f32 %v2162_v10, %v1891_v48 }
 0x12b   : > { %v426_v16 = vadd.f32 %v418_v11, %v410_v58  ;;  %v398_v60 = vmul.f32 %v389_v25, %v2539_v7  ;;  %v420_v23 = vmul.f32 %v389_v25, %v2496_v33 }
 0x12c   : > { %v2164_v18 = vpop.eup %2163  ;;  %v425_v19 = vadd.f32 %v417_v17, %v409_v14  ;;  %v397_v0 = vmul.f32 %v388_v15, %v2543_v13  ;;  %v419_v26 = vmul.f32 %v388_v15, %v2499_v35 }
 0x12d   : > { %v2166_v20 = vpop.eup %2165  ;;  %434 = vst [vmem:[%s2439_s28 + $0x18] sm:$0xff] %v426_v16  ;;  %v412_v21 = vsub.f32 %v1892_v53, %v398_v60  ;;  %v391_v24 = vmul.f32 %v2164_v18, %v1891_v48 }
 0x12e   : > { %433 = vst [vmem:[%s2439_s28 + $0x10] sm:$0xff] %v425_v19  ;;  %v411_v12 = vsub.f32 %v1892_v53, %v397_v0  ;;  %v390_v27 = vmul.f32 %v2166_v20, %v1891_v48 }
 0x12f   : > { %v428_v7 = vadd.f32 %v420_v23, %v412_v21  ;;  %v400_v29 = vmul.f32 %v391_v24, %v2547_v22  ;;  %v422_v31 = vmul.f32 %v391_v24, %v2502_v39 }
 0x130   : > { %v427_v30 = vadd.f32 %v419_v26, %v411_v12  ;;  %v399_v13 = vmul.f32 %v390_v27, %v2551_v28  ;;  %v421_v35 = vmul.f32 %v390_v27, %v2505_v40 }
 0x131   : > { %436 = vst [vmem:[%s2439_s28 + $0x28] sm:$0xff] %v428_v7  ;;  %v414_v33 = vsub.f32 %v1892_v53, %v400_v29 }
 0x132   : > { %435 = vst [vmem:[%s2439_s28 + $0x20] sm:$0xff] %v427_v30  ;;  %v413_v32 = vsub.f32 %v1892_v53, %v399_v13 }
 0x133   : > { %v430_v34 = vadd.f32 %v422_v31, %v414_v33 }
 0x134   : > { %v429_v22 = vadd.f32 %v421_v35, %v413_v32 }
 0x135   : > { %438 = vst [vmem:[%s2439_s28 + $0x38] sm:$0xff] %v430_v34 }
 0x136   : > { %437 = vst [vmem:[%s2439_s28 + $0x30] sm:$0xff] %v429_v22 }
 0x137   : > { %2252 = shalt.err (!%p2249_p5)
}
 0x138   : > { %s2253_s28 = scalar_lea.hbm %s2590_s18, 1024  ;;  %s2257_s25 = scalar_lea.hbm %s2644_s8, 2048 }
 0x139   : > { %p2254_p6 = scmp.ne.s32.totalorder %s2590_s18, %s2253_s28  ;;  %p2258_p9 = scmp.lt.s32.totalorder %s2590_s18, %s2644_s8 }
 0x13a   : > { %p2259_p12 = scmp.lt.s32.totalorder %s2257_s25, %s2253_s28 }
 0x13b   : > { %p2255_p7 = pnand %p2254_p6, %p2425_p10 }
 0x13c   : > { %p2260_p13 = por %p2259_p12, %p2258_p9 }
 0x13d   : > { %p2256_p8 = pneg %p2255_p7 }
 0x13f   : > { %p2261_p0 = pnand %p2260_p13, %p2256_p8 }
 0x141   : > { %2264 = shalt.err (!%p2261_p0)
}
 0x142   : > { %s2331_s29 = smov 128   ;;  %s2332_s21 = smov 8  }
 0x143   : > { %2091 = dma.vmem_to_hbm [thread:$0]  (%p2425_p10), %s2592_s12, 1024, %s2590_s18, %s2598_s19, %s2331_s29, %s2331_s29, %s2332_s21  }
 0x144 PF: > { %p2097_p1 = scmp.ge.s32.totalorder %s2315_s17, 2  ;;  %s468_s9 = sand.u32 1, %s2303_s0  }
 0x145   : > { %s469_s11 = scalar_lea.sflag [#allocation11], %s468_s9 }
 0x146   : > { %p2094_p2 = pnand %p2097_p1, %p2429_p11 }
 0x148   : > { %p2095_p3 = pneg %p2094_p2 }
 0x14a   : > { %2298 = dma.done.wait (%p2095_p3), %s469_s11, 1024  }
 0x14b   : > { %2300 = vsyncadd (%p2095_p3), %s469_s11, 4294966272  ;;  %s2661_s17 = sld [smem:[#allocation25_spill]]  ;;  %s2664_s0 = smov %s2307_s1 }
 0x14c   : > { %s2662_s27 = sld [smem:[#allocation24_spill]] }
 0x14d   : > { %s2663_s16 = sld [smem:[#allocation26_spill]] }
 0x151   : > { %p28_p4 = scmp.ge.s32.totalorder %s2661_s17, 4  }
 0x152   : > { %s2665_s1 = smov %s2662_s27 }
 0x153   :  { %30 = sbr.rel (!%p28_p4) target bundleno = 20 (0x14), region = 347 }
 0x158   :  { %474 = vsyncpa [#allocation11], 1 }
 0x159   :  { %476 = vsyncpa [#allocation11 + $0x1], 1 }
 0x15a   :  { %477 = vsyncmov [#allocation5] }
 0x15d   :  { %s478_s23 = vpop.sfrf %477 }
 0x15e   :  { %p1898_p10 = scmp.ne.s32.totalorder %s478_s23, 0 }
 0x160   :  { %482 = shalt.err (%p1898_p10)  }
 0x161   :  { %484 = vsyncmov [#allocation5 + $0x1] }
 0x164   :  { %s485_s12 = vpop.sfrf %484 }
 0x165   :  { %p1899_p11 = scmp.ne.s32.totalorder %s485_s12, 0 }
 0x167   :  { %489 = shalt.err (%p1899_p11)  }
 0x168   :  { %491 = vsyncmov [#allocation5 + $0x2] }
 0x16b   :  { %s492_s15 = vpop.sfrf %491 }
 0x16c   :  { %p1900_p5 = scmp.ne.s32.totalorder %s492_s15, 0 }
 0x16e   :  { %496 = shalt.err (%p1900_p5)  }
 0x16f   :  { %498 = vsyncmov [#allocation5 + $0x3] }
 0x172   :  { %s499_s18 = vpop.sfrf %498 }
 0x173   :  { %p1901_p6 = scmp.ne.s32.totalorder %s499_s18, 0 }
 0x175   :  { %503 = shalt.err (%p1901_p6)  }
 0x176   :  { %505 = vsyncmov [#allocation5 + $0x4] }
 0x179   :  { %s506_s17 = vpop.sfrf %505 }
 0x17a   :  { %p1902_p7 = scmp.ne.s32.totalorder %s506_s17, 0 }
 0x17c   :  { %510 = shalt.err (%p1902_p7)  }
 0x17d   :  { %512 = vsyncmov [#allocation5 + $0x5] }
 0x180   :  { %s513_s3 = vpop.sfrf %512 }
 0x181   :  { %p1903_p8 = scmp.ne.s32.totalorder %s513_s3, 0 }
 0x183   :  { %517 = shalt.err (%p1903_p8)  }
 0x184   :  { %519 = vsyncmov [#allocation5 + $0x6] }
 0x187   :  { %s520_s4 = vpop.sfrf %519 }
 0x188   :  { %p1904_p9 = scmp.ne.s32.totalorder %s520_s4, 0 }
 0x18a   :  { %524 = shalt.err (%p1904_p9)  }
 0x18b   :  { %526 = vsyncmov [#allocation5 + $0x7] }
 0x18e   :  { %s527_s5 = vpop.sfrf %526 }
 0x18f   :  { %p1905_p12 = scmp.ne.s32.totalorder %s527_s5, 0 }
 0x191   :  { %531 = shalt.err (%p1905_p12)  }
 0x192   :  { %533 = vsyncmov [#allocation5 + $0x8] }
 0x195   :  { %s534_s6 = vpop.sfrf %533 }
 0x196   :  { %p1906_p13 = scmp.ne.s32.totalorder %s534_s6, 0 }
 0x198   :  { %538 = shalt.err (%p1906_p13)  }
 0x199   :  { %540 = vsyncmov [#allocation5 + $0x9] }
 0x19c   :  { %s541_s7 = vpop.sfrf %540 }
 0x19d   :  { %p1907_p0 = scmp.ne.s32.totalorder %s541_s7, 0 }
 0x19f   :  { %545 = shalt.err (%p1907_p0)  }
 0x1a0   :  { %547 = vsyncmov [#allocation5 + $0xa] }
 0x1a3   :  { %s548_s8 = vpop.sfrf %547 }
 0x1a4   :  { %p1908_p1 = scmp.ne.s32.totalorder %s548_s8, 0 }
 0x1a6   :  { %552 = shalt.err (%p1908_p1)  }
 0x1a7   :  { %554 = vsyncmov [#allocation5 + $0xb] }
 0x1aa   :  { %s555_s0 = vpop.sfrf %554 }
 0x1ab   :  { %p1909_p2 = scmp.ne.s32.totalorder %s555_s0, 0 }
 0x1ad   :  { %559 = shalt.err (%p1909_p2)  }
 0x1ae   :  { %561 = vsyncmov [#allocation5 + $0xc] }
 0x1b1   :  { %s562_s1 = vpop.sfrf %561 }
 0x1b2   :  { %p1910_p3 = scmp.ne.s32.totalorder %s562_s1, 0 }
 0x1b4   :  { %566 = shalt.err (%p1910_p3)  }
 0x1b5   :  { %568 = vsyncmov [#allocation5 + $0xd] }
 0x1b8   :  { %s569_s2 = vpop.sfrf %568 }
 0x1b9   :  { %p1911_p4 = scmp.ne.s32.totalorder %s569_s2, 0 }
 0x1bb   :  { %573 = shalt.err (%p1911_p4)  }
 0x1bc   :  { %575 = vsyncmov [#allocation5 + $0xe] }
 0x1bf   :  { %s576_s19 = vpop.sfrf %575 }
 0x1c0   :  { %p1912_p10 = scmp.ne.s32.totalorder %s576_s19, 0 }
 0x1c2   :  { %580 = shalt.err (%p1912_p10)  }
 0x1c3   :  { %582 = vsyncmov [#allocation5 + $0xf] }
 0x1c6   :  { %s583_s14 = vpop.sfrf %582 }
 0x1c7   :  { %p1913_p11 = scmp.ne.s32.totalorder %s583_s14, 0 }
 0x1c9   :  { %587 = shalt.err (%p1913_p11)  }
 0x1ca   :  { %589 = vsyncmov [#allocation5 + $0x10] }
 0x1cd   :  { %s590_s10 = vpop.sfrf %589 }
 0x1ce   :  { %p1914_p5 = scmp.ne.s32.totalorder %s590_s10, 0 }
 0x1d0   :  { %594 = shalt.err (%p1914_p5)  }
 0x1d1   :  { %596 = vsyncmov [#allocation5 + $0x11] }
 0x1d4   :  { %s597_s13 = vpop.sfrf %596 }
 0x1d5   :  { %p1915_p6 = scmp.ne.s32.totalorder %s597_s13, 0 }
 0x1d7   :  { %601 = shalt.err (%p1915_p6)  }
 0x1d8   :  { %603 = vsyncmov [#allocation5 + $0x12] }
 0x1db   :  { %s604_s22 = vpop.sfrf %603 }
 0x1dc   :  { %p1916_p7 = scmp.ne.s32.totalorder %s604_s22, 0 }
 0x1de   :  { %608 = shalt.err (%p1916_p7)  }
 0x1df   :  { %610 = vsyncmov [#allocation5 + $0x13] }
 0x1e2   :  { %s611_s28 = vpop.sfrf %610 }
 0x1e3   :  { %p1917_p8 = scmp.ne.s32.totalorder %s611_s28, 0 }
 0x1e5   :  { %615 = shalt.err (%p1917_p8)  }
 0x1e6   :  { %617 = vsyncmov [#allocation5 + $0x14] }
 0x1e9   :  { %s618_s16 = vpop.sfrf %617 }
 0x1ea   :  { %p1918_p9 = scmp.ne.s32.totalorder %s618_s16, 0 }
 0x1ec   :  { %622 = shalt.err (%p1918_p9)  }
 0x1ed   :  { %624 = vsyncmov [#allocation5 + $0x15] }
 0x1f0   :  { %s625_s24 = vpop.sfrf %624 }
 0x1f1   :  { %p1919_p12 = scmp.ne.s32.totalorder %s625_s24, 0 }
 0x1f3   :  { %629 = shalt.err (%p1919_p12)  }
 0x1f4   :  { %631 = vsyncmov [#allocation5 + $0x16] }
 0x1f7   :  { %s632_s25 = vpop.sfrf %631 }
 0x1f8   :  { %p1920_p13 = scmp.ne.s32.totalorder %s632_s25, 0 }
 0x1fa   :  { %636 = shalt.err (%p1920_p13)  }
 0x1fb   :  { %638 = vsyncmov [#allocation5 + $0x17] }
 0x1fe   :  { %s639_s26 = vpop.sfrf %638 }
 0x1ff   :  { %p1921_p0 = scmp.ne.s32.totalorder %s639_s26, 0 }
 0x201   :  { %643 = shalt.err (%p1921_p0)  }
 0x202   :  { %645 = vsyncmov [#allocation5 + $0x18] }
 0x205   :  { %s646_s20 = vpop.sfrf %645 }
 0x206   :  { %p1922_p1 = scmp.ne.s32.totalorder %s646_s20, 0 }
 0x208   :  { %650 = shalt.err (%p1922_p1)  }
 0x209   :  { %652 = vsyncmov [#allocation5 + $0x19] }
 0x20c   :  { %s653_s29 = vpop.sfrf %652 }
 0x20d   :  { %p1923_p2 = scmp.ne.s32.totalorder %s653_s29, 0 }
 0x20f   :  { %657 = shalt.err (%p1923_p2)  }
 0x210   :  { %659 = vsyncmov [#allocation5 + $0x1a] }
 0x213   :  { %s660_s21 = vpop.sfrf %659 }
 0x214   :  { %p1924_p3 = scmp.ne.s32.totalorder %s660_s21, 0 }
 0x216   :  { %664 = shalt.err (%p1924_p3)  }
 0x217   :  { %666 = vsyncmov [#allocation5 + $0x1b] }
 0x21a   :  { %s667_s30 = vpop.sfrf %666 }
 0x21b   :  { %p1925_p4 = scmp.ne.s32.totalorder %s667_s30, 0 }
 0x21d   :  { %671 = shalt.err (%p1925_p4)  }
 0x21e   :  { %673 = vsyncmov [#allocation5 + $0x1c] }
 0x221   :  { %s674_s9 = vpop.sfrf %673 }
 0x222   :  { %p1926_p10 = scmp.ne.s32.totalorder %s674_s9, 0 }
 0x224   :  { %678 = shalt.err (%p1926_p10)  }
 0x225   :  { %680 = vsyncmov [#allocation5 + $0x1d] }
 0x228   :  { %s681_s11 = vpop.sfrf %680 }
 0x229   :  { %p1927_p11 = scmp.ne.s32.totalorder %s681_s11, 0 }
 0x22b   :  { %685 = shalt.err (%p1927_p11)  }
 0x22c   :  { %687 = vsyncmov [#allocation5 + $0x1e] }
 0x22f   :  { %s688_s27 = vpop.sfrf %687 }
 0x230   :  { %p1928_p5 = scmp.ne.s32.totalorder %s688_s27, 0 }
 0x232   :  { %692 = shalt.err (%p1928_p5)  }
 0x233   :  { %694 = vsyncmov [#allocation5 + $0x1f] }
 0x236   :  { %s695_s23 = vpop.sfrf %694 }
 0x237   :  { %p1929_p6 = scmp.ne.s32.totalorder %s695_s23, 0 }
 0x239   :  { %699 = shalt.err (%p1929_p6)  }
 0x23a   :  { %701 = vsyncmov [#allocation5 + $0x20] }
 0x23d   :  { %s702_s12 = vpop.sfrf %701 }
 0x23e   :  { %p1930_p7 = scmp.ne.s32.totalorder %s702_s12, 0 }
 0x240   :  { %706 = shalt.err (%p1930_p7)  }
 0x241   :  { %708 = vsyncmov [#allocation5 + $0x21] }
 0x244   :  { %s709_s15 = vpop.sfrf %708 }
 0x245   :  { %p1931_p8 = scmp.ne.s32.totalorder %s709_s15, 0 }
 0x247   :  { %713 = shalt.err (%p1931_p8)  }
 0x248   :  { %715 = vsyncmov [#allocation5 + $0x22] }
 0x24b   :  { %s716_s18 = vpop.sfrf %715 }
 0x24c   :  { %p1932_p9 = scmp.ne.s32.totalorder %s716_s18, 0 }
 0x24e   :  { %720 = shalt.err (%p1932_p9)  }
 0x24f   :  { %722 = vsyncmov [#allocation5 + $0x23] }
 0x252   :  { %s723_s17 = vpop.sfrf %722 }
 0x253   :  { %p1933_p12 = scmp.ne.s32.totalorder %s723_s17, 0 }
 0x255   :  { %727 = shalt.err (%p1933_p12)  }
 0x256   :  { %729 = vsyncmov [#allocation5 + $0x24] }
 0x259   :  { %s730_s3 = vpop.sfrf %729 }
 0x25a   :  { %p1934_p13 = scmp.ne.s32.totalorder %s730_s3, 0 }
 0x25c   :  { %734 = shalt.err (%p1934_p13)  }
 0x25d   :  { %736 = vsyncmov [#allocation5 + $0x25] }
 0x260   :  { %s737_s4 = vpop.sfrf %736 }
 0x261   :  { %p1935_p0 = scmp.ne.s32.totalorder %s737_s4, 0 }
 0x263   :  { %741 = shalt.err (%p1935_p0)  }
 0x264   :  { %743 = vsyncmov [#allocation5 + $0x26] }
 0x267   :  { %s744_s5 = vpop.sfrf %743 }
 0x268   :  { %p1936_p1 = scmp.ne.s32.totalorder %s744_s5, 0 }
 0x26a   :  { %748 = shalt.err (%p1936_p1)  }
 0x26b   :  { %750 = vsyncmov [#allocation5 + $0x27] }
 0x26e   :  { %s751_s6 = vpop.sfrf %750 }
 0x26f   :  { %p1937_p2 = scmp.ne.s32.totalorder %s751_s6, 0 }
 0x271   :  { %755 = shalt.err (%p1937_p2)  }
 0x272   :  { %757 = vsyncmov [#allocation5 + $0x28] }
 0x275   :  { %s758_s7 = vpop.sfrf %757 }
 0x276   :  { %p1938_p3 = scmp.ne.s32.totalorder %s758_s7, 0 }
 0x278   :  { %762 = shalt.err (%p1938_p3)  }
 0x279   :  { %764 = vsyncmov [#allocation5 + $0x29] }
 0x27c   :  { %s765_s8 = vpop.sfrf %764 }
 0x27d   :  { %p1939_p4 = scmp.ne.s32.totalorder %s765_s8, 0 }
 0x27f   :  { %769 = shalt.err (%p1939_p4)  }
 0x280   :  { %771 = vsyncmov [#allocation5 + $0x2a] }
 0x283   :  { %s772_s0 = vpop.sfrf %771 }
 0x284   :  { %p1940_p10 = scmp.ne.s32.totalorder %s772_s0, 0 }
 0x286   :  { %776 = shalt.err (%p1940_p10)  }
 0x287   :  { %778 = vsyncmov [#allocation5 + $0x2b] }
 0x28a   :  { %s779_s1 = vpop.sfrf %778 }
 0x28b   :  { %p1941_p11 = scmp.ne.s32.totalorder %s779_s1, 0 }
 0x28d   :  { %783 = shalt.err (%p1941_p11)  }
 0x28e   :  { %785 = vsyncmov [#allocation5 + $0x2c] }
 0x291   :  { %s786_s2 = vpop.sfrf %785 }
 0x292   :  { %p1942_p5 = scmp.ne.s32.totalorder %s786_s2, 0 }
 0x294   :  { %790 = shalt.err (%p1942_p5)  }
 0x295   :  { %792 = vsyncmov [#allocation5 + $0x2d] }
 0x298   :  { %s793_s19 = vpop.sfrf %792 }
 0x299   :  { %p1943_p6 = scmp.ne.s32.totalorder %s793_s19, 0 }
 0x29b   :  { %797 = shalt.err (%p1943_p6)  }
 0x29c   :  { %799 = vsyncmov [#allocation5 + $0x2e] }
 0x29f   :  { %s800_s14 = vpop.sfrf %799 }
 0x2a0   :  { %p1944_p7 = scmp.ne.s32.totalorder %s800_s14, 0 }
 0x2a2   :  { %804 = shalt.err (%p1944_p7)  }
 0x2a3   :  { %806 = vsyncmov [#allocation5 + $0x2f] }
 0x2a6   :  { %s807_s10 = vpop.sfrf %806 }
 0x2a7   :  { %p1945_p8 = scmp.ne.s32.totalorder %s807_s10, 0 }
 0x2a9   :  { %811 = shalt.err (%p1945_p8)  }
 0x2aa   :  { %813 = vsyncmov [#allocation5 + $0x30] }
 0x2ad   :  { %s814_s13 = vpop.sfrf %813 }
 0x2ae   :  { %p1946_p9 = scmp.ne.s32.totalorder %s814_s13, 0 }
 0x2b0   :  { %818 = shalt.err (%p1946_p9)  }
 0x2b1   :  { %820 = vsyncmov [#allocation5 + $0x31] }
 0x2b4   :  { %s821_s22 = vpop.sfrf %820 }
 0x2b5   :  { %p1947_p12 = scmp.ne.s32.totalorder %s821_s22, 0 }
 0x2b7   :  { %825 = shalt.err (%p1947_p12)  }
 0x2b8   :  { %827 = vsyncmov [#allocation5 + $0x32] }
 0x2bb   :  { %s828_s28 = vpop.sfrf %827 }
 0x2bc   :  { %p1948_p13 = scmp.ne.s32.totalorder %s828_s28, 0 }
 0x2be   :  { %832 = shalt.err (%p1948_p13)  }
 0x2bf   :  { %834 = vsyncmov [#allocation5 + $0x33] }
 0x2c2   :  { %s835_s16 = vpop.sfrf %834 }
 0x2c3   :  { %p1949_p0 = scmp.ne.s32.totalorder %s835_s16, 0 }
 0x2c5   :  { %839 = shalt.err (%p1949_p0)  }
 0x2c6   :  { %841 = vsyncmov [#allocation5 + $0x34] }
 0x2c9   :  { %s842_s24 = vpop.sfrf %841 }
 0x2ca   :  { %p1950_p1 = scmp.ne.s32.totalorder %s842_s24, 0 }
 0x2cc   :  { %846 = shalt.err (%p1950_p1)  }
 0x2cd   :  { %848 = vsyncmov [#allocation5 + $0x35] }
 0x2d0   :  { %s849_s25 = vpop.sfrf %848 }
 0x2d1   :  { %p1951_p2 = scmp.ne.s32.totalorder %s849_s25, 0 }
 0x2d3   :  { %853 = shalt.err (%p1951_p2)  }
 0x2d4   :  { %855 = vsyncmov [#allocation5 + $0x36] }
 0x2d7   :  { %s856_s26 = vpop.sfrf %855 }
 0x2d8   :  { %p1952_p3 = scmp.ne.s32.totalorder %s856_s26, 0 }
 0x2da   :  { %860 = shalt.err (%p1952_p3)  }
 0x2db   :  { %862 = vsyncmov [#allocation5 + $0x37] }
 0x2de   :  { %s863_s20 = vpop.sfrf %862 }
 0x2df   :  { %p1953_p4 = scmp.ne.s32.totalorder %s863_s20, 0 }
 0x2e1   :  { %867 = shalt.err (%p1953_p4)  }
 0x2e2   :  { %869 = vsyncmov [#allocation5 + $0x38] }
 0x2e5   :  { %s870_s29 = vpop.sfrf %869 }
 0x2e6   :  { %p1954_p10 = scmp.ne.s32.totalorder %s870_s29, 0 }
 0x2e8   :  { %874 = shalt.err (%p1954_p10)  }
 0x2e9   :  { %876 = vsyncmov [#allocation5 + $0x39] }
 0x2ec   :  { %s877_s21 = vpop.sfrf %876 }
 0x2ed   :  { %p1955_p11 = scmp.ne.s32.totalorder %s877_s21, 0 }
 0x2ef   :  { %881 = shalt.err (%p1955_p11)  }
 0x2f0   :  { %883 = vsyncmov [#allocation5 + $0x3a] }
 0x2f3   :  { %s884_s30 = vpop.sfrf %883 }
 0x2f4   :  { %p1956_p5 = scmp.ne.s32.totalorder %s884_s30, 0 }
 0x2f6   :  { %888 = shalt.err (%p1956_p5)  }
 0x2f7   :  { %890 = vsyncmov [#allocation5 + $0x3b] }
 0x2fa   :  { %s891_s9 = vpop.sfrf %890 }
 0x2fb   :  { %p1957_p6 = scmp.ne.s32.totalorder %s891_s9, 0 }
 0x2fd   :  { %895 = shalt.err (%p1957_p6)  }
 0x2fe   :  { %897 = vsyncmov [#allocation5 + $0x3c] }
 0x301   :  { %s898_s11 = vpop.sfrf %897 }
 0x302   :  { %p1958_p7 = scmp.ne.s32.totalorder %s898_s11, 0 }
 0x304   :  { %902 = shalt.err (%p1958_p7)  }
 0x305   :  { %904 = vsyncmov [#allocation5 + $0x3d] }
 0x308   :  { %s905_s27 = vpop.sfrf %904 }
 0x309   :  { %p1959_p8 = scmp.ne.s32.totalorder %s905_s27, 0 }
 0x30b   :  { %909 = shalt.err (%p1959_p8)  }
 0x30c   :  { %911 = vsyncmov [#allocation5 + $0x3e] }
 0x30f   :  { %s912_s23 = vpop.sfrf %911 }
 0x310   :  { %p1960_p9 = scmp.ne.s32.totalorder %s912_s23, 0 }
 0x312   :  { %916 = shalt.err (%p1960_p9)  }
 0x313   :  { %918 = vsyncmov [#allocation5 + $0x3f] }
 0x316   :  { %s919_s12 = vpop.sfrf %918 }
 0x317   :  { %p1961_p12 = scmp.ne.s32.totalorder %s919_s12, 0 }
 0x319   :  { %923 = shalt.err (%p1961_p12)  }
 0x31a   :  { %925 = vsyncmov [#allocation5 + $0x40] }
 0x31d   :  { %s926_s15 = vpop.sfrf %925 }
 0x31e   :  { %p1962_p13 = scmp.ne.s32.totalorder %s926_s15, 0 }
 0x320   :  { %930 = shalt.err (%p1962_p13)  }
 0x321   :  { %932 = vsyncmov [#allocation5 + $0x41] }
 0x324   :  { %s933_s18 = vpop.sfrf %932 }
 0x325   :  { %p1963_p0 = scmp.ne.s32.totalorder %s933_s18, 0 }
 0x327   :  { %937 = shalt.err (%p1963_p0)  }
 0x328   :  { %939 = vsyncmov [#allocation5 + $0x42] }
 0x32b   :  { %s940_s17 = vpop.sfrf %939 }
 0x32c   :  { %p1964_p1 = scmp.ne.s32.totalorder %s940_s17, 0 }
 0x32e   :  { %944 = shalt.err (%p1964_p1)  }
 0x32f   :  { %946 = vsyncmov [#allocation5 + $0x43] }
 0x332   :  { %s947_s3 = vpop.sfrf %946 }
 0x333   :  { %p1965_p2 = scmp.ne.s32.totalorder %s947_s3, 0 }
 0x335   :  { %951 = shalt.err (%p1965_p2)  }
 0x336   :  { %953 = vsyncmov [#allocation5 + $0x44] }
 0x339   :  { %s954_s4 = vpop.sfrf %953 }
 0x33a   :  { %p1966_p3 = scmp.ne.s32.totalorder %s954_s4, 0 }
 0x33c   :  { %958 = shalt.err (%p1966_p3)  }
 0x33d   :  { %960 = vsyncmov [#allocation5 + $0x45] }
 0x340   :  { %s961_s5 = vpop.sfrf %960 }
 0x341   :  { %p1967_p4 = scmp.ne.s32.totalorder %s961_s5, 0 }
 0x343   :  { %965 = shalt.err (%p1967_p4)  }
 0x344   :  { %967 = vsyncmov [#allocation5 + $0x46] }
 0x347   :  { %s968_s6 = vpop.sfrf %967 }
 0x348   :  { %p1968_p10 = scmp.ne.s32.totalorder %s968_s6, 0 }
 0x34a   :  { %972 = shalt.err (%p1968_p10)  }
 0x34b   :  { %974 = vsyncmov [#allocation5 + $0x47] }
 0x34e   :  { %s975_s7 = vpop.sfrf %974 }
 0x34f   :  { %p1969_p11 = scmp.ne.s32.totalorder %s975_s7, 0 }
 0x351   :  { %979 = shalt.err (%p1969_p11)  }
 0x352   :  { %981 = vsyncmov [#allocation5 + $0x48] }
 0x355   :  { %s982_s8 = vpop.sfrf %981 }
 0x356   :  { %p1970_p5 = scmp.ne.s32.totalorder %s982_s8, 0 }
 0x358   :  { %986 = shalt.err (%p1970_p5)  }
 0x359   :  { %988 = vsyncmov [#allocation5 + $0x49] }
 0x35c   :  { %s989_s0 = vpop.sfrf %988 }
 0x35d   :  { %p1971_p6 = scmp.ne.s32.totalorder %s989_s0, 0 }
 0x35f   :  { %993 = shalt.err (%p1971_p6)  }
 0x360   :  { %995 = vsyncmov [#allocation5 + $0x4a] }
 0x363   :  { %s996_s1 = vpop.sfrf %995 }
 0x364   :  { %p1972_p7 = scmp.ne.s32.totalorder %s996_s1, 0 }
 0x366   :  { %1000 = shalt.err (%p1972_p7)  }
 0x367   :  { %1002 = vsyncmov [#allocation5 + $0x4b] }
 0x36a   :  { %s1003_s2 = vpop.sfrf %1002 }
 0x36b   :  { %p1973_p8 = scmp.ne.s32.totalorder %s1003_s2, 0 }
 0x36d   :  { %1007 = shalt.err (%p1973_p8)  }
 0x36e   :  { %1009 = vsyncmov [#allocation5 + $0x4c] }
 0x371   :  { %s1010_s19 = vpop.sfrf %1009 }
 0x372   :  { %p1974_p9 = scmp.ne.s32.totalorder %s1010_s19, 0 }
 0x374   :  { %1014 = shalt.err (%p1974_p9)  }
 0x375   :  { %1016 = vsyncmov [#allocation5 + $0x4d] }
 0x378   :  { %s1017_s14 = vpop.sfrf %1016 }
 0x379   :  { %p1975_p12 = scmp.ne.s32.totalorder %s1017_s14, 0 }
 0x37b   :  { %1021 = shalt.err (%p1975_p12)  }
 0x37c   :  { %1023 = vsyncmov [#allocation5 + $0x4e] }
 0x37f   :  { %s1024_s10 = vpop.sfrf %1023 }
 0x380   :  { %p1976_p13 = scmp.ne.s32.totalorder %s1024_s10, 0 }
 0x382   :  { %1028 = shalt.err (%p1976_p13)  }
 0x383   :  { %1030 = vsyncmov [#allocation5 + $0x4f] }
 0x386   :  { %s1031_s13 = vpop.sfrf %1030 }
 0x387   :  { %p1977_p0 = scmp.ne.s32.totalorder %s1031_s13, 0 }
 0x389   :  { %1035 = shalt.err (%p1977_p0)  }
 0x38a   :  { %1037 = vsyncmov [#allocation5 + $0x50] }
 0x38d   :  { %s1038_s22 = vpop.sfrf %1037 }
 0x38e   :  { %p1978_p1 = scmp.ne.s32.totalorder %s1038_s22, 0 }
 0x390   :  { %1042 = shalt.err (%p1978_p1)  }
 0x391   :  { %1044 = vsyncmov [#allocation5 + $0x51] }
 0x394   :  { %s1045_s28 = vpop.sfrf %1044 }
 0x395   :  { %p1979_p2 = scmp.ne.s32.totalorder %s1045_s28, 0 }
 0x397   :  { %1049 = shalt.err (%p1979_p2)  }
 0x398   :  { %1051 = vsyncmov [#allocation5 + $0x52] }
 0x39b   :  { %s1052_s16 = vpop.sfrf %1051 }
 0x39c   :  { %p1980_p3 = scmp.ne.s32.totalorder %s1052_s16, 0 }
 0x39e   :  { %1056 = shalt.err (%p1980_p3)  }
 0x39f   :  { %1058 = vsyncmov [#allocation5 + $0x53] }
 0x3a2   :  { %s1059_s24 = vpop.sfrf %1058 }
 0x3a3   :  { %p1981_p4 = scmp.ne.s32.totalorder %s1059_s24, 0 }
 0x3a5   :  { %1063 = shalt.err (%p1981_p4)  }
 0x3a6   :  { %1065 = vsyncmov [#allocation5 + $0x54] }
 0x3a9   :  { %s1066_s25 = vpop.sfrf %1065 }
 0x3aa   :  { %p1982_p10 = scmp.ne.s32.totalorder %s1066_s25, 0 }
 0x3ac   :  { %1070 = shalt.err (%p1982_p10)  }
 0x3ad   :  { %1072 = vsyncmov [#allocation5 + $0x55] }
 0x3b0   :  { %s1073_s26 = vpop.sfrf %1072 }
 0x3b1   :  { %p1983_p11 = scmp.ne.s32.totalorder %s1073_s26, 0 }
 0x3b3   :  { %1077 = shalt.err (%p1983_p11)  }
 0x3b4   :  { %1079 = vsyncmov [#allocation5 + $0x56] }
 0x3b7   :  { %s1080_s20 = vpop.sfrf %1079 }
 0x3b8   :  { %p1984_p5 = scmp.ne.s32.totalorder %s1080_s20, 0 }
 0x3ba   :  { %1084 = shalt.err (%p1984_p5)  }
 0x3bb   :  { %1086 = vsyncmov [#allocation5 + $0x57] }
 0x3be   :  { %s1087_s29 = vpop.sfrf %1086 }
 0x3bf   :  { %p1985_p6 = scmp.ne.s32.totalorder %s1087_s29, 0 }
 0x3c1   :  { %1091 = shalt.err (%p1985_p6)  }
 0x3c2   :  { %1093 = vsyncmov [#allocation5 + $0x58] }
 0x3c5   :  { %s1094_s21 = vpop.sfrf %1093 }
 0x3c6   :  { %p1986_p7 = scmp.ne.s32.totalorder %s1094_s21, 0 }
 0x3c8   :  { %1098 = shalt.err (%p1986_p7)  }
 0x3c9   :  { %1100 = vsyncmov [#allocation5 + $0x59] }
 0x3cc   :  { %s1101_s30 = vpop.sfrf %1100 }
 0x3cd   :  { %p1987_p8 = scmp.ne.s32.totalorder %s1101_s30, 0 }
 0x3cf   :  { %1105 = shalt.err (%p1987_p8)  }
 0x3d0   :  { %1107 = vsyncmov [#allocation5 + $0x5a] }
 0x3d3   :  { %s1108_s9 = vpop.sfrf %1107 }
 0x3d4   :  { %p1988_p9 = scmp.ne.s32.totalorder %s1108_s9, 0 }
 0x3d6   :  { %1112 = shalt.err (%p1988_p9)  }
 0x3d7   :  { %1114 = vsyncmov [#allocation5 + $0x5b] }
 0x3da   :  { %s1115_s11 = vpop.sfrf %1114 }
 0x3db   :  { %p1989_p12 = scmp.ne.s32.totalorder %s1115_s11, 0 }
 0x3dd   :  { %1119 = shalt.err (%p1989_p12)  }
 0x3de   :  { %1121 = vsyncmov [#allocation5 + $0x5c] }
 0x3e1   :  { %s1122_s27 = vpop.sfrf %1121 }
 0x3e2   :  { %p1990_p13 = scmp.ne.s32.totalorder %s1122_s27, 0 }
 0x3e4   :  { %1126 = shalt.err (%p1990_p13)  }
 0x3e5   :  { %1128 = vsyncmov [#allocation5 + $0x5d] }
 0x3e8   :  { %s1129_s23 = vpop.sfrf %1128 }
 0x3e9   :  { %p1991_p0 = scmp.ne.s32.totalorder %s1129_s23, 0 }
 0x3eb   :  { %1133 = shalt.err (%p1991_p0)  }
 0x3ec   :  { %1135 = vsyncmov [#allocation5 + $0x5e] }
 0x3ef   :  { %s1136_s12 = vpop.sfrf %1135 }
 0x3f0   :  { %p1992_p1 = scmp.ne.s32.totalorder %s1136_s12, 0 }
 0x3f2   :  { %1140 = shalt.err (%p1992_p1)  }
 0x3f3   :  { %1142 = vsyncmov [#allocation5 + $0x5f] }
 0x3f6   :  { %s1143_s15 = vpop.sfrf %1142 }
 0x3f7   :  { %p1993_p2 = scmp.ne.s32.totalorder %s1143_s15, 0 }
 0x3f9   :  { %1147 = shalt.err (%p1993_p2)  }
 0x3fa   :  { %1149 = vsyncmov [#allocation5 + $0x60] }
 0x3fd   :  { %s1150_s18 = vpop.sfrf %1149 }
 0x3fe   :  { %p1994_p3 = scmp.ne.s32.totalorder %s1150_s18, 0 }
 0x400   :  { %1154 = shalt.err (%p1994_p3)  }
 0x401   :  { %1156 = vsyncmov [#allocation5 + $0x61] }
 0x404   :  { %s1157_s17 = vpop.sfrf %1156 }
 0x405   :  { %p1995_p4 = scmp.ne.s32.totalorder %s1157_s17, 0 }
 0x407   :  { %1161 = shalt.err (%p1995_p4)  }
 0x408   :  { %1163 = vsyncmov [#allocation5 + $0x62] }
 0x40b   :  { %s1164_s3 = vpop.sfrf %1163 }
 0x40c   :  { %p1996_p10 = scmp.ne.s32.totalorder %s1164_s3, 0 }
 0x40e   :  { %1168 = shalt.err (%p1996_p10)  }
 0x40f   :  { %1170 = vsyncmov [#allocation5 + $0x63] }
 0x412   :  { %s1171_s4 = vpop.sfrf %1170 }
 0x413   :  { %p1997_p11 = scmp.ne.s32.totalorder %s1171_s4, 0 }
 0x415   :  { %1175 = shalt.err (%p1997_p11)  }
 0x416   :  { %1177 = vsyncmov [#allocation5 + $0x64] }
 0x419   :  { %s1178_s5 = vpop.sfrf %1177 }
 0x41a   :  { %p1998_p5 = scmp.ne.s32.totalorder %s1178_s5, 0 }
 0x41c   :  { %1182 = shalt.err (%p1998_p5)  }
 0x41d   :  { %1184 = vsyncmov [#allocation5 + $0x65] }
 0x420   :  { %s1185_s6 = vpop.sfrf %1184 }
 0x421   :  { %p1999_p6 = scmp.ne.s32.totalorder %s1185_s6, 0 }
 0x423   :  { %1189 = shalt.err (%p1999_p6)  }
 0x424   :  { %1191 = vsyncmov [#allocation5 + $0x66] }
 0x427   :  { %s1192_s7 = vpop.sfrf %1191 }
 0x428   :  { %p2000_p7 = scmp.ne.s32.totalorder %s1192_s7, 0 }
 0x42a   :  { %1196 = shalt.err (%p2000_p7)  }
 0x42b   :  { %1198 = vsyncmov [#allocation5 + $0x67] }
 0x42e   :  { %s1199_s8 = vpop.sfrf %1198 }
 0x42f   :  { %p2001_p8 = scmp.ne.s32.totalorder %s1199_s8, 0 }
 0x431   :  { %1203 = shalt.err (%p2001_p8)  }
 0x432   :  { %1205 = vsyncmov [#allocation5 + $0x68] }
 0x435   :  { %s1206_s0 = vpop.sfrf %1205 }
 0x436   :  { %p2002_p9 = scmp.ne.s32.totalorder %s1206_s0, 0 }
 0x438   :  { %1210 = shalt.err (%p2002_p9)  }
 0x439   :  { %1212 = vsyncmov [#allocation5 + $0x69] }
 0x43c   :  { %s1213_s1 = vpop.sfrf %1212 }
 0x43d   :  { %p2003_p12 = scmp.ne.s32.totalorder %s1213_s1, 0 }
 0x43f   :  { %1217 = shalt.err (%p2003_p12)  }
 0x440   :  { %1219 = vsyncmov [#allocation5 + $0x6a] }
 0x443   :  { %s1220_s2 = vpop.sfrf %1219 }
 0x444   :  { %p2004_p13 = scmp.ne.s32.totalorder %s1220_s2, 0 }
 0x446   :  { %1224 = shalt.err (%p2004_p13)  }
 0x447   :  { %1226 = vsyncmov [#allocation5 + $0x6b] }
 0x44a   :  { %s1227_s19 = vpop.sfrf %1226 }
 0x44b   :  { %p2005_p0 = scmp.ne.s32.totalorder %s1227_s19, 0 }
 0x44d   :  { %1231 = shalt.err (%p2005_p0)  }
 0x44e   :  { %1233 = vsyncmov [#allocation5 + $0x6c] }
 0x451   :  { %s1234_s14 = vpop.sfrf %1233 }
 0x452   :  { %p2006_p1 = scmp.ne.s32.totalorder %s1234_s14, 0 }
 0x454   :  { %1238 = shalt.err (%p2006_p1)  }
 0x455   :  { %1240 = vsyncmov [#allocation5 + $0x6d] }
 0x458   :  { %s1241_s10 = vpop.sfrf %1240 }
 0x459   :  { %p2007_p2 = scmp.ne.s32.totalorder %s1241_s10, 0 }
 0x45b   :  { %1245 = shalt.err (%p2007_p2)  }
 0x45c   :  { %1247 = vsyncmov [#allocation5 + $0x6e] }
 0x45f   :  { %s1248_s13 = vpop.sfrf %1247 }
 0x460   :  { %p2008_p3 = scmp.ne.s32.totalorder %s1248_s13, 0 }
 0x462   :  { %1252 = shalt.err (%p2008_p3)  }
 0x463   :  { %1254 = vsyncmov [#allocation5 + $0x6f] }
 0x466   :  { %s1255_s22 = vpop.sfrf %1254 }
 0x467   :  { %p2009_p4 = scmp.ne.s32.totalorder %s1255_s22, 0 }
 0x469   :  { %1259 = shalt.err (%p2009_p4)  }
 0x46a   :  { %1261 = vsyncmov [#allocation5 + $0x70] }
 0x46d   :  { %s1262_s28 = vpop.sfrf %1261 }
 0x46e   :  { %p2010_p10 = scmp.ne.s32.totalorder %s1262_s28, 0 }
 0x470   :  { %1266 = shalt.err (%p2010_p10)  }
 0x471   :  { %1268 = vsyncmov [#allocation5 + $0x71] }
 0x474   :  { %s1269_s16 = vpop.sfrf %1268 }
 0x475   :  { %p2011_p11 = scmp.ne.s32.totalorder %s1269_s16, 0 }
 0x477   :  { %1273 = shalt.err (%p2011_p11)  }
 0x478   :  { %1275 = vsyncmov [#allocation5 + $0x72] }
 0x47b   :  { %s1276_s24 = vpop.sfrf %1275 }
 0x47c   :  { %p2012_p5 = scmp.ne.s32.totalorder %s1276_s24, 0 }
 0x47e   :  { %1280 = shalt.err (%p2012_p5)  }
 0x47f   :  { %1282 = vsyncmov [#allocation5 + $0x73] }
 0x482   :  { %s1283_s25 = vpop.sfrf %1282 }
 0x483   :  { %p2013_p6 = scmp.ne.s32.totalorder %s1283_s25, 0 }
 0x485   :  { %1287 = shalt.err (%p2013_p6)  }
 0x486   :  { %1289 = vsyncmov [#allocation5 + $0x74] }
 0x489   :  { %s1290_s26 = vpop.sfrf %1289 }
 0x48a   :  { %p2014_p7 = scmp.ne.s32.totalorder %s1290_s26, 0 }
 0x48c   :  { %1294 = shalt.err (%p2014_p7)  }
 0x48d   :  { %1296 = vsyncmov [#allocation5 + $0x75] }
 0x490   :  { %s1297_s20 = vpop.sfrf %1296 }
 0x491   :  { %p2015_p8 = scmp.ne.s32.totalorder %s1297_s20, 0 }
 0x493   :  { %1301 = shalt.err (%p2015_p8)  }
 0x494   :  { %1303 = vsyncmov [#allocation5 + $0x76] }
 0x497   :  { %s1304_s29 = vpop.sfrf %1303 }
 0x498   :  { %p2016_p9 = scmp.ne.s32.totalorder %s1304_s29, 0 }
 0x49a   :  { %1308 = shalt.err (%p2016_p9)  }
 0x49b   :  { %1310 = vsyncmov [#allocation5 + $0x77] }
 0x49e   :  { %s1311_s21 = vpop.sfrf %1310 }
 0x49f   :  { %p2017_p12 = scmp.ne.s32.totalorder %s1311_s21, 0 }
 0x4a1   :  { %1315 = shalt.err (%p2017_p12)  }
 0x4a2   :  { %1317 = vsyncmov [#allocation5 + $0x78] }
 0x4a5   :  { %s1318_s30 = vpop.sfrf %1317 }
 0x4a6   :  { %p2018_p13 = scmp.ne.s32.totalorder %s1318_s30, 0 }
 0x4a8   :  { %1322 = shalt.err (%p2018_p13)  }
 0x4a9   :  { %1324 = vsyncmov [#allocation5 + $0x79] }
 0x4ac   :  { %s1325_s9 = vpop.sfrf %1324 }
 0x4ad   :  { %p2019_p0 = scmp.ne.s32.totalorder %s1325_s9, 0 }
 0x4af   :  { %1329 = shalt.err (%p2019_p0)  }
 0x4b0   :  { %1331 = vsyncmov [#allocation5 + $0x7a] }
 0x4b3   :  { %s1332_s11 = vpop.sfrf %1331 }
 0x4b4   :  { %p2020_p1 = scmp.ne.s32.totalorder %s1332_s11, 0 }
 0x4b6   :  { %1336 = shalt.err (%p2020_p1)  }
 0x4b7   :  { %1338 = vsyncmov [#allocation5 + $0x7b] }
 0x4ba   :  { %s1339_s27 = vpop.sfrf %1338 }
 0x4bb   :  { %p2021_p2 = scmp.ne.s32.totalorder %s1339_s27, 0 }
 0x4bd   :  { %1343 = shalt.err (%p2021_p2)  }
 0x4be   :  { %1345 = vsyncmov [#allocation5 + $0x7c] }
 0x4c1   :  { %s1346_s23 = vpop.sfrf %1345 }
 0x4c2   :  { %p2022_p3 = scmp.ne.s32.totalorder %s1346_s23, 0 }
 0x4c4   :  { %1350 = shalt.err (%p2022_p3)  }
 0x4c5   :  { %1352 = vsyncmov [#allocation5 + $0x7d] }
 0x4c8   :  { %s1353_s12 = vpop.sfrf %1352 }
 0x4c9   :  { %p2023_p4 = scmp.ne.s32.totalorder %s1353_s12, 0 }
 0x4cb   :  { %1357 = shalt.err (%p2023_p4)  }
 0x4cc   :  { %1359 = vsyncmov [#allocation5 + $0x7e] }
 0x4cf   :  { %s1360_s15 = vpop.sfrf %1359 }
 0x4d0   :  { %p2024_p10 = scmp.ne.s32.totalorder %s1360_s15, 0 }
 0x4d2   :  { %1364 = shalt.err (%p2024_p10)  }
 0x4d3   :  { %1366 = vsyncmov [#allocation5 + $0x7f] }
 0x4d6   :  { %s1367_s18 = vpop.sfrf %1366 }
 0x4d7   :  { %p2025_p11 = scmp.ne.s32.totalorder %s1367_s18, 0 }
 0x4d9   :  { %1371 = shalt.err (%p2025_p11)  }
 0x4da   :  { %1373 = vsyncmov [#allocation5 + $0x80] }
 0x4dd   :  { %s1374_s17 = vpop.sfrf %1373 }
 0x4de   :  { %p2026_p5 = scmp.ne.s32.totalorder %s1374_s17, 0 }
 0x4e0   :  { %1378 = shalt.err (%p2026_p5)  }
 0x4e1   :  { %1380 = vsyncmov [#allocation5 + $0x81] }
 0x4e4   :  { %s1381_s3 = vpop.sfrf %1380 }
 0x4e5   :  { %p2027_p6 = scmp.ne.s32.totalorder %s1381_s3, 0 }
 0x4e7   :  { %1385 = shalt.err (%p2027_p6)  }
 0x4e8   :  { %1387 = vsyncmov [#allocation5 + $0x82] }
 0x4eb   :  { %s1388_s4 = vpop.sfrf %1387 }
 0x4ec   :  { %p2028_p7 = scmp.ne.s32.totalorder %s1388_s4, 0 }
 0x4ee   :  { %1392 = shalt.err (%p2028_p7)  }
 0x4ef   :  { %1394 = vsyncmov [#allocation5 + $0x83] }
 0x4f2   :  { %s1395_s5 = vpop.sfrf %1394 }
 0x4f3   :  { %p2029_p8 = scmp.ne.s32.totalorder %s1395_s5, 0 }
 0x4f5   :  { %1399 = shalt.err (%p2029_p8)  }
 0x4f6   :  { %1401 = vsyncmov [#allocation5 + $0x84] }
 0x4f9   :  { %s1402_s6 = vpop.sfrf %1401 }
 0x4fa   :  { %p2030_p9 = scmp.ne.s32.totalorder %s1402_s6, 0 }
 0x4fc   :  { %1406 = shalt.err (%p2030_p9)  }
 0x4fd   :  { %1408 = vsyncmov [#allocation5 + $0x85] }
 0x500   :  { %s1409_s7 = vpop.sfrf %1408 }
 0x501   :  { %p2031_p12 = scmp.ne.s32.totalorder %s1409_s7, 0 }
 0x503   :  { %1413 = shalt.err (%p2031_p12)  }
 0x504   :  { %1415 = vsyncmov [#allocation5 + $0x86] }
 0x507   :  { %s1416_s8 = vpop.sfrf %1415 }
 0x508   :  { %p2032_p13 = scmp.ne.s32.totalorder %s1416_s8, 0 }
 0x50a   :  { %1420 = shalt.err (%p2032_p13)  }
 0x50b   :  { %1422 = vsyncmov [#allocation5 + $0x87] }
 0x50e   :  { %s1423_s0 = vpop.sfrf %1422 }
 0x50f   :  { %p2033_p0 = scmp.ne.s32.totalorder %s1423_s0, 0 }
 0x511   :  { %1427 = shalt.err (%p2033_p0)  }
 0x512   :  { %1429 = vsyncmov [#allocation5 + $0x88] }
 0x515   :  { %s1430_s1 = vpop.sfrf %1429 }
 0x516   :  { %p2034_p1 = scmp.ne.s32.totalorder %s1430_s1, 0 }
 0x518   :  { %1434 = shalt.err (%p2034_p1)  }
 0x519   :  { %1436 = vsyncmov [#allocation5 + $0x89] }
 0x51c   :  { %s1437_s2 = vpop.sfrf %1436 }
 0x51d   :  { %p2035_p2 = scmp.ne.s32.totalorder %s1437_s2, 0 }
 0x51f   :  { %1441 = shalt.err (%p2035_p2)  }
 0x520   :  { %1443 = vsyncmov [#allocation5 + $0x8a] }
 0x523   :  { %s1444_s19 = vpop.sfrf %1443 }
 0x524   :  { %p2036_p3 = scmp.ne.s32.totalorder %s1444_s19, 0 }
 0x526   :  { %1448 = shalt.err (%p2036_p3)  }
 0x527   :  { %1450 = vsyncmov [#allocation5 + $0x8b] }
 0x52a   :  { %s1451_s14 = vpop.sfrf %1450 }
 0x52b   :  { %p2037_p4 = scmp.ne.s32.totalorder %s1451_s14, 0 }
 0x52d   :  { %1455 = shalt.err (%p2037_p4)  }
 0x52e   :  { %1457 = vsyncmov [#allocation5 + $0x8c] }
 0x531   :  { %s1458_s10 = vpop.sfrf %1457 }
 0x532   :  { %p2038_p10 = scmp.ne.s32.totalorder %s1458_s10, 0 }
 0x534   :  { %1462 = shalt.err (%p2038_p10)  }
 0x535   :  { %1464 = vsyncmov [#allocation5 + $0x8d] }
 0x538   :  { %s1465_s13 = vpop.sfrf %1464 }
 0x539   :  { %p2039_p11 = scmp.ne.s32.totalorder %s1465_s13, 0 }
 0x53b   :  { %1469 = shalt.err (%p2039_p11)  }
 0x53c   :  { %1471 = vsyncmov [#allocation5 + $0x8e] }
 0x53f   :  { %s1472_s22 = vpop.sfrf %1471 }
 0x540   :  { %p2040_p5 = scmp.ne.s32.totalorder %s1472_s22, 0 }
 0x542   :  { %1476 = shalt.err (%p2040_p5)  }
 0x543   :  { %1478 = vsyncmov [#allocation5 + $0x8f] }
 0x546   :  { %s1479_s28 = vpop.sfrf %1478 }
 0x547   :  { %p2041_p6 = scmp.ne.s32.totalorder %s1479_s28, 0 }
 0x549   :  { %1483 = shalt.err (%p2041_p6)  }
 0x54a   :  { %1485 = vsyncmov [#allocation5 + $0x90] }
 0x54d   :  { %s1486_s16 = vpop.sfrf %1485 }
 0x54e   :  { %p2042_p7 = scmp.ne.s32.totalorder %s1486_s16, 0 }
 0x550   :  { %1490 = shalt.err (%p2042_p7)  }
 0x551   :  { %1492 = vsyncmov [#allocation5 + $0x91] }
 0x554   :  { %s1493_s24 = vpop.sfrf %1492 }
 0x555   :  { %p2043_p8 = scmp.ne.s32.totalorder %s1493_s24, 0 }
 0x557   :  { %1497 = shalt.err (%p2043_p8)  }
 0x558   :  { %1499 = vsyncmov [#allocation5 + $0x92] }
 0x55b   :  { %s1500_s25 = vpop.sfrf %1499 }
 0x55c   :  { %p2044_p9 = scmp.ne.s32.totalorder %s1500_s25, 0 }
 0x55e   :  { %1504 = shalt.err (%p2044_p9)  }
 0x55f   :  { %1506 = vsyncmov [#allocation5 + $0x93] }
 0x562   :  { %s1507_s26 = vpop.sfrf %1506 }
 0x563   :  { %p2045_p12 = scmp.ne.s32.totalorder %s1507_s26, 0 }
 0x565   :  { %1511 = shalt.err (%p2045_p12)  }
 0x566   :  { %1513 = vsyncmov [#allocation5 + $0x94] }
 0x569   :  { %s1514_s20 = vpop.sfrf %1513 }
 0x56a   :  { %p2046_p13 = scmp.ne.s32.totalorder %s1514_s20, 0 }
 0x56c   :  { %1518 = shalt.err (%p2046_p13)  }
 0x56d   :  { %1520 = vsyncmov [#allocation5 + $0x95] }
 0x570   :  { %s1521_s29 = vpop.sfrf %1520 }
 0x571   :  { %p2047_p0 = scmp.ne.s32.totalorder %s1521_s29, 0 }
 0x573   :  { %1525 = shalt.err (%p2047_p0)  }
 0x574   :  { %1527 = vsyncmov [#allocation5 + $0x96] }
 0x577   :  { %s1528_s21 = vpop.sfrf %1527 }
 0x578   :  { %p2048_p1 = scmp.ne.s32.totalorder %s1528_s21, 0 }
 0x57a   :  { %1532 = shalt.err (%p2048_p1)  }
 0x57b   :  { %1534 = vsyncmov [#allocation5 + $0x97] }
 0x57e   :  { %s1535_s30 = vpop.sfrf %1534 }
 0x57f   :  { %p2049_p2 = scmp.ne.s32.totalorder %s1535_s30, 0 }
 0x581   :  { %1539 = shalt.err (%p2049_p2)  }
 0x582   :  { %1541 = vsyncmov [#allocation5 + $0x98] }
 0x585   :  { %s1542_s9 = vpop.sfrf %1541 }
 0x586   :  { %p2050_p3 = scmp.ne.s32.totalorder %s1542_s9, 0 }
 0x588   :  { %1546 = shalt.err (%p2050_p3)  }
 0x589   :  { %1548 = vsyncmov [#allocation5 + $0x99] }
 0x58c   :  { %s1549_s11 = vpop.sfrf %1548 }
 0x58d   :  { %p2051_p4 = scmp.ne.s32.totalorder %s1549_s11, 0 }
 0x58f   :  { %1553 = shalt.err (%p2051_p4)  }
 0x590   :  { %1555 = vsyncmov [#allocation5 + $0x9a] }
 0x593   :  { %s1556_s27 = vpop.sfrf %1555 }
 0x594   :  { %p2052_p10 = scmp.ne.s32.totalorder %s1556_s27, 0 }
 0x596   :  { %1560 = shalt.err (%p2052_p10)  }
 0x597   :  { %1562 = vsyncmov [#allocation5 + $0x9b] }
 0x59a   :  { %s1563_s23 = vpop.sfrf %1562 }
 0x59b   :  { %p2053_p11 = scmp.ne.s32.totalorder %s1563_s23, 0 }
 0x59d   :  { %1567 = shalt.err (%p2053_p11)  }
 0x59e   :  { %1569 = vsyncmov [#allocation5 + $0x9c] }
 0x5a1   :  { %s1570_s12 = vpop.sfrf %1569 }
 0x5a2   :  { %p2054_p5 = scmp.ne.s32.totalorder %s1570_s12, 0 }
 0x5a4   :  { %1574 = shalt.err (%p2054_p5)  }
 0x5a5   :  { %1576 = vsyncmov [#allocation5 + $0x9d] }
 0x5a8   :  { %s1577_s15 = vpop.sfrf %1576 }
 0x5a9   :  { %p2055_p6 = scmp.ne.s32.totalorder %s1577_s15, 0 }
 0x5ab   :  { %1581 = shalt.err (%p2055_p6)  }
 0x5ac   :  { %1583 = vsyncmov [#allocation5 + $0x9e] }
 0x5af   :  { %s1584_s18 = vpop.sfrf %1583 }
 0x5b0   :  { %p2056_p7 = scmp.ne.s32.totalorder %s1584_s18, 0 }
 0x5b2   :  { %1588 = shalt.err (%p2056_p7)  }
 0x5b3   :  { %1590 = vsyncmov [#allocation5 + $0x9f] }
 0x5b6   :  { %s1591_s17 = vpop.sfrf %1590 }
 0x5b7   :  { %p2057_p8 = scmp.ne.s32.totalorder %s1591_s17, 0 }
 0x5b9   :  { %1595 = shalt.err (%p2057_p8)  }
 0x5ba   :  { %1597 = vsyncmov [#allocation5 + $0xa0] }
 0x5bd   :  { %s1598_s3 = vpop.sfrf %1597 }
 0x5be   :  { %p2058_p9 = scmp.ne.s32.totalorder %s1598_s3, 0 }
 0x5c0   :  { %1602 = shalt.err (%p2058_p9)  }
 0x5c1   :  { %1604 = vsyncmov [#allocation5 + $0xa1] }
 0x5c4   :  { %s1605_s4 = vpop.sfrf %1604 }
 0x5c5   :  { %p2059_p12 = scmp.ne.s32.totalorder %s1605_s4, 0 }
 0x5c7   :  { %1609 = shalt.err (%p2059_p12)  }
 0x5c8   :  { %1611 = vsyncmov [#allocation5 + $0xa2] }
 0x5cb   :  { %s1612_s5 = vpop.sfrf %1611 }
 0x5cc   :  { %p2060_p13 = scmp.ne.s32.totalorder %s1612_s5, 0 }
 0x5ce   :  { %1616 = shalt.err (%p2060_p13)  }
 0x5cf   :  { %1618 = vsyncmov [#allocation5 + $0xa3] }
 0x5d2   :  { %s1619_s6 = vpop.sfrf %1618 }
 0x5d3   :  { %p2061_p0 = scmp.ne.s32.totalorder %s1619_s6, 0 }
 0x5d5   :  { %1623 = shalt.err (%p2061_p0)  }
 0x5d6   :  { %1625 = vsyncmov [#allocation5 + $0xa4] }
 0x5d9   :  { %s1626_s7 = vpop.sfrf %1625 }
 0x5da   :  { %p2062_p1 = scmp.ne.s32.totalorder %s1626_s7, 0 }
 0x5dc   :  { %1630 = shalt.err (%p2062_p1)  }
 0x5dd   :  { %1632 = vsyncmov [#allocation5 + $0xa5] }
 0x5e0   :  { %s1633_s8 = vpop.sfrf %1632 }
 0x5e1   :  { %p2063_p2 = scmp.ne.s32.totalorder %s1633_s8, 0 }
 0x5e3   :  { %1637 = shalt.err (%p2063_p2)  }
 0x5e4   :  { %1639 = vsyncmov [#allocation5 + $0xa6] }
 0x5e7   :  { %s1640_s0 = vpop.sfrf %1639 }
 0x5e8   :  { %p2064_p3 = scmp.ne.s32.totalorder %s1640_s0, 0 }
 0x5ea   :  { %1644 = shalt.err (%p2064_p3)  }
 0x5eb   :  { %1646 = vsyncmov [#allocation5 + $0xa7] }
 0x5ee   :  { %s1647_s1 = vpop.sfrf %1646 }
 0x5ef   :  { %p2065_p4 = scmp.ne.s32.totalorder %s1647_s1, 0 }
 0x5f1   :  { %1651 = shalt.err (%p2065_p4)  }
 0x5f2   :  { %1653 = vsyncmov [#allocation5 + $0xa8] }
 0x5f5   :  { %s1654_s2 = vpop.sfrf %1653 }
 0x5f6   :  { %p2066_p10 = scmp.ne.s32.totalorder %s1654_s2, 0 }
 0x5f8   :  { %1658 = shalt.err (%p2066_p10)  }
 0x5f9   :  { %1660 = vsyncmov [#allocation5 + $0xa9] }
 0x5fc   :  { %s1661_s19 = vpop.sfrf %1660 }
 0x5fd   :  { %p2067_p11 = scmp.ne.s32.totalorder %s1661_s19, 0 }
 0x5ff   :  { %1665 = shalt.err (%p2067_p11)  }
 0x600   :  { %1667 = vsyncmov [#allocation5 + $0xaa] }
 0x603   :  { %s1668_s14 = vpop.sfrf %1667 }
 0x604   :  { %p2068_p5 = scmp.ne.s32.totalorder %s1668_s14, 0 }
 0x606   :  { %1672 = shalt.err (%p2068_p5)  }
 0x607   :  { %1674 = vsyncmov [#allocation5 + $0xab] }
 0x60a   :  { %s1675_s10 = vpop.sfrf %1674 }
 0x60b   :  { %p2069_p6 = scmp.ne.s32.totalorder %s1675_s10, 0 }
 0x60d   :  { %1679 = shalt.err (%p2069_p6)  }
 0x60e   :  { %1681 = vsyncmov [#allocation5 + $0xac] }
 0x611   :  { %s1682_s13 = vpop.sfrf %1681 }
 0x612   :  { %p2070_p7 = scmp.ne.s32.totalorder %s1682_s13, 0 }
 0x614   :  { %1686 = shalt.err (%p2070_p7)  }
 0x615   :  { %1688 = vsyncmov [#allocation5 + $0xad] }
 0x618   :  { %s1689_s22 = vpop.sfrf %1688 }
 0x619   :  { %p2071_p8 = scmp.ne.s32.totalorder %s1689_s22, 0 }
 0x61b   :  { %1693 = shalt.err (%p2071_p8)  }
 0x61c   :  { %1695 = vsyncmov [#allocation5 + $0xae] }
 0x61f   :  { %s1696_s28 = vpop.sfrf %1695 }
 0x620   :  { %p2072_p9 = scmp.ne.s32.totalorder %s1696_s28, 0 }
 0x622   :  { %1700 = shalt.err (%p2072_p9)  }
 0x623   :  { %1702 = vsyncmov [#allocation5 + $0xaf] }
 0x626   :  { %s1703_s16 = vpop.sfrf %1702 }
 0x627   :  { %p2073_p12 = scmp.ne.s32.totalorder %s1703_s16, 0 }
 0x629   :  { %1707 = shalt.err (%p2073_p12)  }
 0x62a   :  { %1709 = vsyncmov [#allocation5 + $0xb0] }
 0x62d   :  { %s1710_s24 = vpop.sfrf %1709 }
 0x62e   :  { %p2074_p13 = scmp.ne.s32.totalorder %s1710_s24, 0 }
 0x630   :  { %1714 = shalt.err (%p2074_p13)  }
 0x631   :  { %1716 = vsyncmov [#allocation5 + $0xb1] }
 0x634   :  { %s1717_s25 = vpop.sfrf %1716 }
 0x635   :  { %p2075_p0 = scmp.ne.s32.totalorder %s1717_s25, 0 }
 0x637   :  { %1721 = shalt.err (%p2075_p0)  }
 0x638   :  { %1723 = vsyncmov [#allocation5 + $0xb2] }
 0x63b   :  { %s1724_s26 = vpop.sfrf %1723 }
 0x63c   :  { %p2076_p1 = scmp.ne.s32.totalorder %s1724_s26, 0 }
 0x63e   :  { %1728 = shalt.err (%p2076_p1)  }
 0x63f   :  { %1730 = vsyncmov [#allocation5 + $0xb3] }
 0x642   :  { %s1731_s20 = vpop.sfrf %1730 }
 0x643   :  { %p2077_p2 = scmp.ne.s32.totalorder %s1731_s20, 0 }
 0x645   :  { %1735 = shalt.err (%p2077_p2)  }
 0x646   :  { %1737 = vsyncmov [#allocation5 + $0xb4] }
 0x649   :  { %s1738_s29 = vpop.sfrf %1737 }
 0x64a   :  { %p2078_p3 = scmp.ne.s32.totalorder %s1738_s29, 0 }
 0x64c   :  { %1742 = shalt.err (%p2078_p3)  }
 0x64d   :  { %1744 = vsyncmov [#allocation5 + $0xb5] }
 0x650   :  { %s1745_s21 = vpop.sfrf %1744 }
 0x651   :  { %p2079_p4 = scmp.ne.s32.totalorder %s1745_s21, 0 }
 0x653   :  { %1749 = shalt.err (%p2079_p4)  }
 0x654   :  { %1751 = vsyncmov [#allocation5 + $0xb6] }
 0x657   :  { %s1752_s30 = vpop.sfrf %1751 }
 0x658   :  { %p2080_p10 = scmp.ne.s32.totalorder %s1752_s30, 0 }
 0x65a   :  { %1756 = shalt.err (%p2080_p10)  }
 0x65b   :  { %1758 = vsyncmov [#allocation5 + $0xb7] }
 0x65e   :  { %s1759_s9 = vpop.sfrf %1758 }
 0x65f   :  { %p2081_p11 = scmp.ne.s32.totalorder %s1759_s9, 0 }
 0x661   :  { %1763 = shalt.err (%p2081_p11)  }
 0x662   :  { %1765 = vsyncmov [#allocation5 + $0xb8] }
 0x665   :  { %s1766_s11 = vpop.sfrf %1765 }
 0x666   :  { %p2082_p5 = scmp.ne.s32.totalorder %s1766_s11, 0 }
 0x668   :  { %1770 = shalt.err (%p2082_p5)  }
 0x669   :  { %1772 = vsyncmov [#allocation5 + $0xb9] }
 0x66c   :  { %s1773_s27 = vpop.sfrf %1772 }
 0x66d   :  { %p2083_p6 = scmp.ne.s32.totalorder %s1773_s27, 0 }
 0x66f   :  { %1777 = shalt.err (%p2083_p6)  }
 0x670   :  { %1779 = vsyncmov [#allocation5 + $0xba] }
 0x673   :  { %s1780_s23 = vpop.sfrf %1779 }
 0x674   :  { %p2084_p7 = scmp.ne.s32.totalorder %s1780_s23, 0 }
 0x676   :  { %1784 = shalt.err (%p2084_p7)  }
 0x677   :  { %1786 = vsyncmov [#allocation5 + $0xbb] }
 0x67a   :  { %s1787_s12 = vpop.sfrf %1786 }
 0x67b   :  { %p2085_p8 = scmp.ne.s32.totalorder %s1787_s12, 0 }
 0x67d   :  { %1791 = shalt.err (%p2085_p8)  }
 0x67e   :  { %1793 = vsyncmov [#allocation5 + $0xbc] }
 0x681   :  { %s1794_s15 = vpop.sfrf %1793 }
 0x682   :  { %p2086_p9 = scmp.ne.s32.totalorder %s1794_s15, 0 }
 0x684   :  { %1798 = shalt.err (%p2086_p9)  }
 0x685   :  { %1800 = vsyncmov [#allocation5 + $0xbd] }
 0x688   :  { %s1801_s18 = vpop.sfrf %1800 }
 0x689   :  { %p2087_p12 = scmp.ne.s32.totalorder %s1801_s18, 0 }
 0x68b   :  { %1805 = shalt.err (%p2087_p12)  }
 0x68c   :  { %1807 = vsyncmov [#allocation5 + $0xbe] }
 0x68f   :  { %s1808_s17 = vpop.sfrf %1807 }
 0x690   :  { %p2088_p13 = scmp.ne.s32.totalorder %s1808_s17, 0 }
 0x692   :  { %1812 = shalt.err (%p2088_p13)  }
 0x693   :  { %1814 = vsyncmov [#allocation5 + $0xbf] }
 0x696   :  { %s1815_s3 = vpop.sfrf %1814 }
 0x697   :  { %p2089_p0 = scmp.ne.s32.totalorder %s1815_s3, 0 }
 0x699   :  { %1819 = shalt.err (%p2089_p0)  }

</bundles_post_ra>
